<compile_context>
chip_gen: v6e
topology: v6e:2x2x1
jax: 0.10.0
libtpu: 0.0.40
codegen_flags: <defaults>
</compile_context>

<pallas_src>
import jax
import jax.numpy as jnp
from jax import lax
from jax.experimental import pallas as pl
from jax.experimental.pallas import tpu as pltpu
import numpy as np


def _round_up(x, m):
    return (x + m - 1) // m * m


# --------------------------------------------------------------------------
# Kernel 1: hoisted, fully parallel x-branch.
#   XU[t] = Â_t @ (x_t @ Wx_cat) + b_cat        (all 3 gates fused, bf16 MXU)
# --------------------------------------------------------------------------
def xbranch_kernel(adj_ref, x_ref, wx_ref, b_ref, o_ref):
    # adj_ref: (1, Np, Np) bf16   x_ref: (1, Np, F) bf16
    # wx_ref : (F, 3*Hp)   bf16   b_ref: (1, 3*Hp) f32  (combined b_x + b_h)
    # o_ref  : (1, Np, 3*Hp) f32  (lane-dense: 3*Hp is a multiple of 128)
    xw = jnp.dot(x_ref[0], wx_ref[...],
                 preferred_element_type=jnp.float32)            # (Np, 3Hp) f32
    axw = jnp.dot(adj_ref[0], xw.astype(jnp.bfloat16),
                  preferred_element_type=jnp.float32)           # (Np, 3Hp) f32
    o_ref[0] = axw + b_ref[...]


def _xbranch(adjs_bf, xs_bf, wx_cat_bf, b_cat):
    T, Np, _ = adjs_bf.shape
    F = xs_bf.shape[-1]
    GH = wx_cat_bf.shape[-1]                       # 3 * Hp
    return pl.pallas_call(
        xbranch_kernel,
        out_shape=jax.ShapeDtypeStruct((T, Np, GH), jnp.float32),
        grid=(T,),
        in_specs=[
            pl.BlockSpec((1, Np, Np), lambda t: (t, 0, 0)),
            pl.BlockSpec((1, Np, F), lambda t: (t, 0, 0)),
            pl.BlockSpec((F, GH), lambda t: (0, 0)),
            pl.BlockSpec((1, GH), lambda t: (0, 0)),
        ],
        out_specs=pl.BlockSpec((1, Np, GH), lambda t: (t, 0, 0)),
        compiler_params=pltpu.CompilerParams(
            dimension_semantics=("parallel",)),    # independent per timestep
    )(adjs_bf, xs_bf, wx_cat_bf, b_cat)


# --------------------------------------------------------------------------
# Kernel 2: serial GRU recurrence, single invocation, in-kernel loop over T.
# --------------------------------------------------------------------------
def recurrent_kernel(adj_ref, xu_ref, whzr_ref, whh_ref, o_ref, h_ref):
    # adj_ref : (T, Np, Np)  bf16     xu_ref: (T, Np, 3*Hp) f32
    # whzr_ref: (Hp, 2*Hp)   f32      whh_ref: (Hp, Hp)     f32
    # o_ref   : (T, Np, Hp)  f32      h_ref (scratch): (Np, Hp) f32
    T = adj_ref.shape[0]
    Hp = whh_ref.shape[0]

    h_ref[...] = jnp.zeros_like(h_ref)             # h0 = 0

    def step(t, carry):
        a = adj_ref[t].astype(jnp.float32)         # (Np, Np)
        xu = xu_ref[t]                             # (Np, 3Hp) incl. biases
        h = h_ref[...]                             # (Np, Hp)

        # fused z/r hidden-gate: one (Hp -> 2Hp) matmul + one Â aggregation
        g = jnp.dot(a,
                    jnp.dot(h, whzr_ref[...],
                            preferred_element_type=jnp.float32),
                    preferred_element_type=jnp.float32)          # (Np, 2Hp)
        z = jax.nn.sigmoid(xu[:, 0:Hp] + g[:, 0:Hp])
        r = jax.nn.sigmoid(xu[:, Hp:2 * Hp] + g[:, Hp:2 * Hp])

        hh = jnp.tanh(
            xu[:, 2 * Hp:3 * Hp]
            + jnp.dot(a,
                      jnp.dot(r * h, whh_ref[...],
                              preferred_element_type=jnp.float32),
                      preferred_element_type=jnp.float32))

        # reference computes `z_g * h[i]` with i == 0  -> row-0 broadcast
        h0 = h[0:1, :]
        h_new = z * h0 + (1.0 - z) * hh

        h_ref[...] = h_new
        o_ref[t] = h_new
        return carry

    lax.fori_loop(0, T, step, 0, unroll=True)


def _recurrent(adjs_bf, xu, wh_zr, wh_h):
    T, Np, _ = adjs_bf.shape
    Hp = wh_h.shape[0]
    GH = xu.shape[-1]
    return pl.pallas_call(
        recurrent_kernel,
        out_shape=jax.ShapeDtypeStruct((T, Np, Hp), jnp.float32),
        grid=(1,),                                  # grid collapsed; loop in-kernel
        in_specs=[
            pl.BlockSpec((T, Np, Np), lambda i: (0, 0, 0)),
            pl.BlockSpec((T, Np, GH), lambda i: (0, 0, 0)),
            pl.BlockSpec((Hp, 2 * Hp), lambda i: (0, 0)),
            pl.BlockSpec((Hp, Hp), lambda i: (0, 0)),
        ],
        out_specs=pl.BlockSpec((T, Np, Hp), lambda i: (0, 0, 0)),
        scratch_shapes=[pltpu.VMEM((Np, Hp), jnp.float32)],
        compiler_params=pltpu.CompilerParams(
            dimension_semantics=("arbitrary",)),    # sequential recurrence
    )(adjs_bf, xu, wh_zr, wh_h)


# --------------------------------------------------------------------- wrapper
@jax.jit
def graph_gru_forward(adjs, xs, Wx, Wh, b):
    """adjs: (T,N,N) f32 normalized adjacency; xs: (T,N,F) f32;
    Wx: (3,F,H), Wh: (3,H,H), b: (3,H) combined (b_x+b_h) biases, gate order z,r,h.
    Returns (T, N, H) f32 — hidden state at every timestep."""
    T, N, F = xs.shape
    H = Wx.shape[-1]
    Np = _round_up(N, 8)          # sublane padding
    Hp = _round_up(H, 128)        # lane padding -> lane-dense stores
    GH = 3 * Hp

    # ---- pad & fuse parameters (zero padding keeps padded lanes/rows inert)
    wx_cat = jnp.zeros((F, GH), jnp.float32)
    b_cat = jnp.zeros((1, GH), jnp.float32)
    for g in range(3):
        wx_cat = wx_cat.at[:, g * Hp:g * Hp + H].set(Wx[g])
        b_cat = b_cat.at[0, g * Hp:g * Hp + H].set(b[g])
    wh_zr = jnp.zeros((Hp, 2 * Hp), jnp.float32)
    for g in range(2):
        wh_zr = wh_zr.at[:H, g * Hp:g * Hp + H].set(Wh[g])
    wh_h = jnp.zeros((Hp, Hp), jnp.float32).at[:H, :H].set(Wh[2])

    # ---- pad data; bf16 for the bandwidth-heavy Â / x / Wx operands
    adjs_bf = jnp.zeros((T, Np, Np), jnp.bfloat16).at[:, :N, :N].set(
        adjs.astype(jnp.bfloat16))
    xs_bf = jnp.zeros((T, Np, F), jnp.bfloat16).at[:, :N, :].set(
        xs.astype(jnp.bfloat16))

    xu = _xbranch(adjs_bf, xs_bf, wx_cat.astype(jnp.bfloat16), b_cat)
    out = _recurrent(adjs_bf, xu, wh_zr, wh_h)
    return out[:, :N, :H]


# ---------------------------------------------------------------- glue / ref
def normalized_adjacency(A):
    """Dense GCN normalization with self-loops: D^-1/2 (A + I) D^-1/2."""
    N = A.shape[0]
    A_hat = A + jnp.eye(N, dtype=A.dtype)
    deg = jnp.sum(A_hat, axis=1)
    d_inv_sqrt = jnp.where(deg > 0, 1.0 / jnp.sqrt(deg), 0.0)
    return d_inv_sqrt[:, None] * A_hat * d_inv_sqrt[None, :]


def ref_forward(adjs, xs, Wx, Wh, b):
    """Pure-JAX f32 reference mirroring the PyTorch forward (eval mode)."""
    T, N, _ = xs.shape
    H = Wx.shape[-1]
    h = jnp.zeros((N, H), jnp.float32)
    outs = []
    for t in range(T):
        A, x = adjs[t], xs[t]
        gcn = lambda inp, W: A @ (inp @ W)
        z = jax.nn.sigmoid(gcn(x, Wx[0]) + gcn(h, Wh[0]) + b[0])
        r = jax.nn.sigmoid(gcn(x, Wx[1]) + gcn(h, Wh[1]) + b[1])
        hh = jnp.tanh(gcn(x, Wx[2]) + gcn(r * h, Wh[2]) + b[2])
        h = z * h[0] + (1.0 - z) * hh        # same row-0 broadcast as torch code
        outs.append(h)
    return jnp.stack(outs)


if __name__ == "__main__":
    T, N, F, H = 4, 16, 8, 32          # seq len, nodes, in_size, hidden_size
    key = jax.random.PRNGKey(0)
    k_x, k_a, k_wx, k_wh, k_b = jax.random.split(key, 5)

    xs = jax.random.normal(k_x, (T, N, F), jnp.float32)

    raw = jax.random.bernoulli(k_a, 0.3, (T, N, N)).astype(jnp.float32)
    adjs = jnp.stack([normalized_adjacency(
        jnp.maximum(raw[t], raw[t].T) * (1.0 - jnp.eye(N))) for t in range(T)])

    # GCNConv parameters; per-gate biases already combined (b_x + b_h), order z,r,h
    Wx = jax.random.normal(k_wx, (3, F, H), jnp.float32) * (1.0 / np.sqrt(F))
    Wh = jax.random.normal(k_wh, (3, H, H), jnp.float32) * (1.0 / np.sqrt(H))
    b = jax.random.normal(k_b, (3, H), jnp.float32) * 0.01

    out = jax.block_until_ready(graph_gru_forward(adjs, xs, Wx, Wh, b))
    ref = ref_forward(adjs, xs, Wx, Wh, b)

    assert out.shape == (T, N, H), out.shape
    # bf16 storage of Â / x / Wx (with f32 accumulation) costs ~1e-3..1e-2
    # absolute error vs. the pure-f32 reference; tolerance loosened accordingly.
    np.testing.assert_allclose(np.asarray(out), np.asarray(ref),
                               rtol=5e-2, atol=5e-2)
    print("KERNEL_OK")
</pallas_src>

<mosaic_0001>
module attributes {stable_mosaic.version = 11 : i64} {
  func.func @xbranch_kernel(%arg0: i32, %arg1: memref<1x16x16xbf16, #tpu.memory_space<vmem>>, %arg2: memref<1x16x8xbf16, #tpu.memory_space<vmem>>, %arg3: memref<8x384xbf16, #tpu.memory_space<vmem>>, %arg4: memref<1x384xf32, #tpu.memory_space<vmem>>, %arg5: memref<1x16x384xf32, #tpu.memory_space<vmem>>) attributes {dimension_semantics = [#tpu.dimension_semantics<parallel>], iteration_bounds = array<i64: 4>, scalar_prefetch = 0 : i64, scratch_operands = 0 : i64, tpu.core_type = #tpu.core_type<tc>, window_params = [{transform_indices = @transform_0, window_bounds = array<i64: 1, 16, 16>}, {transform_indices = @transform_1, window_bounds = array<i64: 1, 16, 8>}, {pipeline_mode = #tpu.pipeline_mode<synchronous>, transform_indices = @transform_2, window_bounds = array<i64: 8, 384>}, {pipeline_mode = #tpu.pipeline_mode<synchronous>, transform_indices = @transform_3, window_bounds = array<i64: 1, 384>}, {transform_indices = @transform_4, window_bounds = array<i64: 1, 16, 384>}]} {
    %c0 = arith.constant 0 : index
    %c0_0 = arith.constant 0 : index
    %c0_1 = arith.constant 0 : index
    %0 = vector.load %arg2[%c0, %c0_0, %c0_1] : memref<1x16x8xbf16, #tpu.memory_space<vmem>>, vector<1x16x8xbf16>
    %1 = vector.shape_cast %0 : vector<1x16x8xbf16> to vector<16x8xbf16>
    %c0_2 = arith.constant 0 : index
    %c0_3 = arith.constant 0 : index
    %2 = vector.load %arg3[%c0_2, %c0_3] : memref<8x384xbf16, #tpu.memory_space<vmem>>, vector<8x384xbf16>
    %cst = arith.constant dense<0.000000e+00> : vector<16x384xf32>
    %3 = tpu.matmul %1, %2, %cst {dimension_numbers = #tpu.dot_dimension_numbers<[1], [0], [0], [1], [0, 0, 1, 1], [], []>} : vector<16x8xbf16>, vector<8x384xbf16>, vector<16x384xf32> -> vector<16x384xf32>
    %c0_4 = arith.constant 0 : index
    %c0_5 = arith.constant 0 : index
    %c0_6 = arith.constant 0 : index
    %4 = vector.load %arg1[%c0_4, %c0_5, %c0_6] : memref<1x16x16xbf16, #tpu.memory_space<vmem>>, vector<1x16x16xbf16>
    %5 = vector.shape_cast %4 : vector<1x16x16xbf16> to vector<16x16xbf16>
    %6 = arith.truncf %3 : vector<16x384xf32> to vector<16x384xbf16>
    %cst_7 = arith.constant dense<0.000000e+00> : vector<16x384xf32>
    %7 = tpu.matmul %5, %6, %cst_7 {dimension_numbers = #tpu.dot_dimension_numbers<[1], [0], [0], [1], [0, 0, 1, 1], [], []>} : vector<16x16xbf16>, vector<16x384xbf16>, vector<16x384xf32> -> vector<16x384xf32>
    %c0_8 = arith.constant 0 : index
    %c0_9 = arith.constant 0 : index
    %8 = vector.load %arg4[%c0_8, %c0_9] : memref<1x384xf32, #tpu.memory_space<vmem>>, vector<1x384xf32>
    %9 = vector.broadcast %8 : vector<1x384xf32> to vector<16x384xf32>
    %10 = arith.addf %7, %9 : vector<16x384xf32>
    %c0_10 = arith.constant 0 : index
    %c0_11 = arith.constant 0 : index
    %c0_12 = arith.constant 0 : index
    %11 = vector.load %arg5[%c0_10, %c0_11, %c0_12] : memref<1x16x384xf32, #tpu.memory_space<vmem>>, vector<1x16x384xf32>
    %12 = vector.shape_cast %11 : vector<1x16x384xf32> to vector<16x384xf32>
    %13 = vector.shape_cast %10 : vector<16x384xf32> to vector<1x16x384xf32>
    tpu.vector_store %arg5[%c0_10, %c0_11, %c0_12], %13 {strides = array<i32>} : memref<1x16x384xf32, #tpu.memory_space<vmem>>, vector<1x16x384xf32>,
    return
  }
  func.func @transform_0(%arg0: i32) -> (i32, i32, i32) {
    %c0_i32 = arith.constant 0 : i32
    %c0_i32_0 = arith.constant 0 : i32
    %c0_i32_1 = arith.constant 0 : i32
    return %arg0, %c0_i32, %c0_i32_0 : i32, i32, i32
  }
  func.func @transform_1(%arg0: i32) -> (i32, i32, i32) {
    %c0_i32 = arith.constant 0 : i32
    %c0_i32_0 = arith.constant 0 : i32
    %c0_i32_1 = arith.constant 0 : i32
    return %arg0, %c0_i32, %c0_i32_0 : i32, i32, i32
  }
  func.func @transform_2(%arg0: i32) -> (i32, i32) {
    %c0_i32 = arith.constant 0 : i32
    %c0_i32_0 = arith.constant 0 : i32
    %c0_i32_1 = arith.constant 0 : i32
    return %c0_i32, %c0_i32_0 : i32, i32
  }
  func.func @transform_3(%arg0: i32) -> (i32, i32) {
    %c0_i32 = arith.constant 0 : i32
    %c0_i32_0 = arith.constant 0 : i32
    %c0_i32_1 = arith.constant 0 : i32
    return %c0_i32, %c0_i32_0 : i32, i32
  }
  func.func @transform_4(%arg0: i32) -> (i32, i32, i32) {
    %c0_i32 = arith.constant 0 : i32
    %c0_i32_0 = arith.constant 0 : i32
    %c0_i32_1 = arith.constant 0 : i32
    return %arg0, %c0_i32, %c0_i32_0 : i32, i32, i32
  }
}

module attributes {stable_mosaic.version = 11 : i64} {
  func.func @recurrent_kernel(%arg0: i32, %arg1: memref<4x16x16xbf16, #tpu.memory_space<vmem>>, %arg2: memref<4x16x384xf32, #tpu.memory_space<vmem>>, %arg3: memref<128x256xf32, #tpu.memory_space<vmem>>, %arg4: memref<128x128xf32, #tpu.memory_space<vmem>>, %arg5: memref<4x16x128xf32, #tpu.memory_space<vmem>>, %arg6: memref<16x128xf32, #tpu.memory_space<vmem>>) attributes {dimension_semantics = [#tpu.dimension_semantics<arbitrary>], iteration_bounds = array<i64: 1>, scalar_prefetch = 0 : i64, scratch_operands = 1 : i64, tpu.core_type = #tpu.core_type<tc>, window_params = [{pipeline_mode = #tpu.pipeline_mode<synchronous>, transform_indices = @transform_0, window_bounds = array<i64: 4, 16, 16>}, {pipeline_mode = #tpu.pipeline_mode<synchronous>, transform_indices = @transform_1, window_bounds = array<i64: 4, 16, 384>}, {pipeline_mode = #tpu.pipeline_mode<synchronous>, transform_indices = @transform_2, window_bounds = array<i64: 128, 256>}, {pipeline_mode = #tpu.pipeline_mode<synchronous>, transform_indices = @transform_3, window_bounds = array<i64: 128, 128>}, {pipeline_mode = #tpu.pipeline_mode<synchronous>, transform_indices = @transform_4, window_bounds = array<i64: 4, 16, 128>}]} {
    %cst = arith.constant 0.000000e+00 : f32
    %0 = vector.broadcast %cst : f32 to vector<16x128xf32>
    %c0 = arith.constant 0 : index
    %c0_0 = arith.constant 0 : index
    %1 = vector.load %arg6[%c0, %c0_0] : memref<16x128xf32, #tpu.memory_space<vmem>>, vector<16x128xf32>
    tpu.vector_store %arg6[%c0, %c0_0], %0 {strides = array<i32>} : memref<16x128xf32, #tpu.memory_space<vmem>>, vector<16x128xf32>,
    %c0_i32 = arith.constant 0 : i32
    %2 = arith.index_cast %c0_i32 : i32 to index
    %c0_1 = arith.constant 0 : index
    %c0_2 = arith.constant 0 : index
    %3 = vector.load %arg1[%2, %c0_1, %c0_2] : memref<4x16x16xbf16, #tpu.memory_space<vmem>>, vector<1x16x16xbf16>
    %4 = vector.shape_cast %3 : vector<1x16x16xbf16> to vector<16x16xbf16>
    %5 = arith.extf %4 : vector<16x16xbf16> to vector<16x16xf32>
    %6 = arith.index_cast %c0_i32 : i32 to index
    %c0_3 = arith.constant 0 : index
    %c0_4 = arith.constant 0 : index
    %7 = vector.load %arg2[%6, %c0_3, %c0_4] : memref<4x16x384xf32, #tpu.memory_space<vmem>>, vector<1x16x384xf32>
    %8 = vector.shape_cast %7 : vector<1x16x384xf32> to vector<16x384xf32>
    %c0_5 = arith.constant 0 : index
    %c0_6 = arith.constant 0 : index
    %9 = vector.load %arg6[%c0_5, %c0_6] : memref<16x128xf32, #tpu.memory_space<vmem>>, vector<16x128xf32>
    %c0_7 = arith.constant 0 : index
    %c0_8 = arith.constant 0 : index
    %10 = vector.load %arg3[%c0_7, %c0_8] : memref<128x256xf32, #tpu.memory_space<vmem>>, vector<128x256xf32>
    %cst_9 = arith.constant dense<0.000000e+00> : vector<16x256xf32>
    %11 = tpu.matmul %9, %10, %cst_9 {dimension_numbers = #tpu.dot_dimension_numbers<[1], [0], [0], [1], [0, 0, 1, 1], [], []>} : vector<16x128xf32>, vector<128x256xf32>, vector<16x256xf32> -> vector<16x256xf32>
    %cst_10 = arith.constant dense<0.000000e+00> : vector<16x256xf32>
    %12 = tpu.matmul %5, %11, %cst_10 {dimension_numbers = #tpu.dot_dimension_numbers<[1], [0], [0], [1], [0, 0, 1, 1], [], []>} : vector<16x16xf32>, vector<16x256xf32>, vector<16x256xf32> -> vector<16x256xf32>
    %13 = vector.extract_strided_slice %8 {offsets = [0, 0], sizes = [16, 128], strides = [1, 1]} : vector<16x384xf32> to vector<16x128xf32>
    %14 = vector.extract_strided_slice %12 {offsets = [0, 0], sizes = [16, 128], strides = [1, 1]} : vector<16x256xf32> to vector<16x128xf32>
    %15 = arith.addf %13, %14 : vector<16x128xf32>
    %16 = arith.negf %15 : vector<16x128xf32>
    %17 = math.exp %16 : vector<16x128xf32>
    %cst_11 = arith.constant 1.000000e+00 : f32
    %18 = vector.broadcast %cst_11 : f32 to vector<16x128xf32>
    %19 = arith.addf %18, %17 : vector<16x128xf32>
    %20 = arith.divf %18, %19 : vector<16x128xf32>
    %21 = vector.extract_strided_slice %8 {offsets = [0, 128], sizes = [16, 128], strides = [1, 1]} : vector<16x384xf32> to vector<16x128xf32>
    %22 = vector.extract_strided_slice %12 {offsets = [0, 128], sizes = [16, 128], strides = [1, 1]} : vector<16x256xf32> to vector<16x128xf32>
    %23 = arith.addf %21, %22 : vector<16x128xf32>
    %24 = arith.negf %23 : vector<16x128xf32>
    %25 = math.exp %24 : vector<16x128xf32>
    %cst_12 = arith.constant 1.000000e+00 : f32
    %26 = vector.broadcast %cst_12 : f32 to vector<16x128xf32>
    %27 = arith.addf %26, %25 : vector<16x128xf32>
    %28 = arith.divf %26, %27 : vector<16x128xf32>
    %29 = vector.extract_strided_slice %8 {offsets = [0, 256], sizes = [16, 128], strides = [1, 1]} : vector<16x384xf32> to vector<16x128xf32>
    %30 = arith.mulf %28, %9 : vector<16x128xf32>
    %c0_13 = arith.constant 0 : index
    %c0_14 = arith.constant 0 : index
    %31 = vector.load %arg4[%c0_13, %c0_14] : memref<128x128xf32, #tpu.memory_space<vmem>>, vector<128x128xf32>
    %cst_15 = arith.constant dense<0.000000e+00> : vector<16x128xf32>
    %32 = tpu.matmul %30, %31, %cst_15 {dimension_numbers = #tpu.dot_dimension_numbers<[1], [0], [0], [1], [0, 0, 1, 1], [], []>} : vector<16x128xf32>, vector<128x128xf32>, vector<16x128xf32> -> vector<16x128xf32>
    %cst_16 = arith.constant dense<0.000000e+00> : vector<16x128xf32>
    %33 = tpu.matmul %5, %32, %cst_16 {dimension_numbers = #tpu.dot_dimension_numbers<[1], [0], [0], [1], [0, 0, 1, 1], [], []>} : vector<16x16xf32>, vector<16x128xf32>, vector<16x128xf32> -> vector<16x128xf32>
    %34 = arith.addf %29, %33 : vector<16x128xf32>
    %35 = math.tanh %34 : vector<16x128xf32>
    %36 = vector.extract_strided_slice %9 {offsets = [0, 0], sizes = [1, 128], strides = [1, 1]} : vector<16x128xf32> to vector<1x128xf32>
    %37 = vector.broadcast %36 : vector<1x128xf32> to vector<16x128xf32>
    %38 = arith.mulf %20, %37 : vector<16x128xf32>
    %cst_17 = arith.constant 1.000000e+00 : f32
    %39 = vector.broadcast %cst_17 : f32 to vector<16x128xf32>
    %40 = arith.subf %39, %20 : vector<16x128xf32>
    %41 = arith.mulf %40, %35 : vector<16x128xf32>
    %42 = arith.addf %38, %41 : vector<16x128xf32>
    %c0_18 = arith.constant 0 : index
    %c0_19 = arith.constant 0 : index
    %43 = vector.load %arg6[%c0_18, %c0_19] : memref<16x128xf32, #tpu.memory_space<vmem>>, vector<16x128xf32>
    tpu.vector_store %arg6[%c0_18, %c0_19], %42 {strides = array<i32>} : memref<16x128xf32, #tpu.memory_space<vmem>>, vector<16x128xf32>,
    %44 = arith.index_cast %c0_i32 : i32 to index
    %c0_20 = arith.constant 0 : index
    %c0_21 = arith.constant 0 : index
    %45 = vector.load %arg5[%44, %c0_20, %c0_21] : memref<4x16x128xf32, #tpu.memory_space<vmem>>, vector<1x16x128xf32>
    %46 = vector.shape_cast %45 : vector<1x16x128xf32> to vector<16x128xf32>
    %47 = vector.shape_cast %42 : vector<16x128xf32> to vector<1x16x128xf32>
    tpu.vector_store %arg5[%44, %c0_20, %c0_21], %47 {strides = array<i32>} : memref<4x16x128xf32, #tpu.memory_space<vmem>>, vector<1x16x128xf32>,
    %c1_i32 = arith.constant 1 : i32
    %48 = arith.index_cast %c1_i32 : i32 to index
    %c0_22 = arith.constant 0 : index
    %c0_23 = arith.constant 0 : index
    %49 = vector.load %arg1[%48, %c0_22, %c0_23] : memref<4x16x16xbf16, #tpu.memory_space<vmem>>, vector<1x16x16xbf16>
    %50 = vector.shape_cast %49 : vector<1x16x16xbf16> to vector<16x16xbf16>
    %51 = arith.extf %50 : vector<16x16xbf16> to vector<16x16xf32>
    %52 = arith.index_cast %c1_i32 : i32 to index
    %c0_24 = arith.constant 0 : index
    %c0_25 = arith.constant 0 : index
    %53 = vector.load %arg2[%52, %c0_24, %c0_25] : memref<4x16x384xf32, #tpu.memory_space<vmem>>, vector<1x16x384xf32>
    %54 = vector.shape_cast %53 : vector<1x16x384xf32> to vector<16x384xf32>
    %c0_26 = arith.constant 0 : index
    %c0_27 = arith.constant 0 : index
    %55 = vector.load %arg6[%c0_26, %c0_27] : memref<16x128xf32, #tpu.memory_space<vmem>>, vector<16x128xf32>
    %c0_28 = arith.constant 0 : index
    %c0_29 = arith.constant 0 : index
    %56 = vector.load %arg3[%c0_28, %c0_29] : memref<128x256xf32, #tpu.memory_space<vmem>>, vector<128x256xf32>
    %cst_30 = arith.constant dense<0.000000e+00> : vector<16x256xf32>
    %57 = tpu.matmul %55, %56, %cst_30 {dimension_numbers = #tpu.dot_dimension_numbers<[1], [0], [0], [1], [0, 0, 1, 1], [], []>} : vector<16x128xf32>, vector<128x256xf32>, vector<16x256xf32> -> vector<16x256xf32>
    %cst_31 = arith.constant dense<0.000000e+00> : vector<16x256xf32>
    %58 = tpu.matmul %51, %57, %cst_31 {dimension_numbers = #tpu.dot_dimension_numbers<[1], [0], [0], [1], [0, 0, 1, 1], [], []>} : vector<16x16xf32>, vector<16x256xf32>, vector<16x256xf32> -> vector<16x256xf32>
    %59 = vector.extract_strided_slice %54 {offsets = [0, 0], sizes = [16, 128], strides = [1, 1]} : vector<16x384xf32> to vector<16x128xf32>
    %60 = vector.extract_strided_slice %58 {offsets = [0, 0], sizes = [16, 128], strides = [1, 1]} : vector<16x256xf32> to vector<16x128xf32>
    %61 = arith.addf %59, %60 : vector<16x128xf32>
    %62 = arith.negf %61 : vector<16x128xf32>
    %63 = math.exp %62 : vector<16x128xf32>
    %cst_32 = arith.constant 1.000000e+00 : f32
    %64 = vector.broadcast %cst_32 : f32 to vector<16x128xf32>
    %65 = arith.addf %64, %63 : vector<16x128xf32>
    %66 = arith.divf %64, %65 : vector<16x128xf32>
    %67 = vector.extract_strided_slice %54 {offsets = [0, 128], sizes = [16, 128], strides = [1, 1]} : vector<16x384xf32> to vector<16x128xf32>
    %68 = vector.extract_strided_slice %58 {offsets = [0, 128], sizes = [16, 128], strides = [1, 1]} : vector<16x256xf32> to vector<16x128xf32>
    %69 = arith.addf %67, %68 : vector<16x128xf32>
    %70 = arith.negf %69 : vector<16x128xf32>
    %71 = math.exp %70 : vector<16x128xf32>
    %cst_33 = arith.constant 1.000000e+00 : f32
    %72 = vector.broadcast %cst_33 : f32 to vector<16x128xf32>
    %73 = arith.addf %72, %71 : vector<16x128xf32>
    %74 = arith.divf %72, %73 : vector<16x128xf32>
    %75 = vector.extract_strided_slice %54 {offsets = [0, 256], sizes = [16, 128], strides = [1, 1]} : vector<16x384xf32> to vector<16x128xf32>
    %76 = arith.mulf %74, %55 : vector<16x128xf32>
    %c0_34 = arith.constant 0 : index
    %c0_35 = arith.constant 0 : index
    %77 = vector.load %arg4[%c0_34, %c0_35] : memref<128x128xf32, #tpu.memory_space<vmem>>, vector<128x128xf32>
    %cst_36 = arith.constant dense<0.000000e+00> : vector<16x128xf32>
    %78 = tpu.matmul %76, %77, %cst_36 {dimension_numbers = #tpu.dot_dimension_numbers<[1], [0], [0], [1], [0, 0, 1, 1], [], []>} : vector<16x128xf32>, vector<128x128xf32>, vector<16x128xf32> -> vector<16x128xf32>
    %cst_37 = arith.constant dense<0.000000e+00> : vector<16x128xf32>
    %79 = tpu.matmul %51, %78, %cst_37 {dimension_numbers = #tpu.dot_dimension_numbers<[1], [0], [0], [1], [0, 0, 1, 1], [], []>} : vector<16x16xf32>, vector<16x128xf32>, vector<16x128xf32> -> vector<16x128xf32>
    %80 = arith.addf %75, %79 : vector<16x128xf32>
    %81 = math.tanh %80 : vector<16x128xf32>
    %82 = vector.extract_strided_slice %55 {offsets = [0, 0], sizes = [1, 128], strides = [1, 1]} : vector<16x128xf32> to vector<1x128xf32>
    %83 = vector.broadcast %82 : vector<1x128xf32> to vector<16x128xf32>
    %84 = arith.mulf %66, %83 : vector<16x128xf32>
    %cst_38 = arith.constant 1.000000e+00 : f32
    %85 = vector.broadcast %cst_38 : f32 to vector<16x128xf32>
    %86 = arith.subf %85, %66 : vector<16x128xf32>
    %87 = arith.mulf %86, %81 : vector<16x128xf32>
    %88 = arith.addf %84, %87 : vector<16x128xf32>
    %c0_39 = arith.constant 0 : index
    %c0_40 = arith.constant 0 : index
    %89 = vector.load %arg6[%c0_39, %c0_40] : memref<16x128xf32, #tpu.memory_space<vmem>>, vector<16x128xf32>
    tpu.vector_store %arg6[%c0_39, %c0_40], %88 {strides = array<i32>} : memref<16x128xf32, #tpu.memory_space<vmem>>, vector<16x128xf32>,
    %90 = arith.index_cast %c1_i32 : i32 to index
    %c0_41 = arith.constant 0 : index
    %c0_42 = arith.constant 0 : index
    %91 = vector.load %arg5[%90, %c0_41, %c0_42] : memref<4x16x128xf32, #tpu.memory_space<vmem>>, vector<1x16x128xf32>
    %92 = vector.shape_cast %91 : vector<1x16x128xf32> to vector<16x128xf32>
    %93 = vector.shape_cast %88 : vector<16x128xf32> to vector<1x16x128xf32>
    tpu.vector_store %arg5[%90, %c0_41, %c0_42], %93 {strides = array<i32>} : memref<4x16x128xf32, #tpu.memory_space<vmem>>, vector<1x16x128xf32>,
    %c2_i32 = arith.constant 2 : i32
    %94 = arith.index_cast %c2_i32 : i32 to index
    %c0_43 = arith.constant 0 : index
    %c0_44 = arith.constant 0 : index
    %95 = vector.load %arg1[%94, %c0_43, %c0_44] : memref<4x16x16xbf16, #tpu.memory_space<vmem>>, vector<1x16x16xbf16>
    %96 = vector.shape_cast %95 : vector<1x16x16xbf16> to vector<16x16xbf16>
    %97 = arith.extf %96 : vector<16x16xbf16> to vector<16x16xf32>
    %98 = arith.index_cast %c2_i32 : i32 to index
    %c0_45 = arith.constant 0 : index
    %c0_46 = arith.constant 0 : index
    %99 = vector.load %arg2[%98, %c0_45, %c0_46] : memref<4x16x384xf32, #tpu.memory_space<vmem>>, vector<1x16x384xf32>
    %100 = vector.shape_cast %99 : vector<1x16x384xf32> to vector<16x384xf32>
    %c0_47 = arith.constant 0 : index
    %c0_48 = arith.constant 0 : index
    %101 = vector.load %arg6[%c0_47, %c0_48] : memref<16x128xf32, #tpu.memory_space<vmem>>, vector<16x128xf32>
    %c0_49 = arith.constant 0 : index
    %c0_50 = arith.constant 0 : index
    %102 = vector.load %arg3[%c0_49, %c0_50] : memref<128x256xf32, #tpu.memory_space<vmem>>, vector<128x256xf32>
    %cst_51 = arith.constant dense<0.000000e+00> : vector<16x256xf32>
    %103 = tpu.matmul %101, %102, %cst_51 {dimension_numbers = #tpu.dot_dimension_numbers<[1], [0], [0], [1], [0, 0, 1, 1], [], []>} : vector<16x128xf32>, vector<128x256xf32>, vector<16x256xf32> -> vector<16x256xf32>
    %cst_52 = arith.constant dense<0.000000e+00> : vector<16x256xf32>
    %104 = tpu.matmul %97, %103, %cst_52 {dimension_numbers = #tpu.dot_dimension_numbers<[1], [0], [0], [1], [0, 0, 1, 1], [], []>} : vector<16x16xf32>, vector<16x256xf32>, vector<16x256xf32> -> vector<16x256xf32>
    %105 = vector.extract_strided_slice %100 {offsets = [0, 0], sizes = [16, 128], strides = [1, 1]} : vector<16x384xf32> to vector<16x128xf32>
    %106 = vector.extract_strided_slice %104 {offsets = [0, 0], sizes = [16, 128], strides = [1, 1]} : vector<16x256xf32> to vector<16x128xf32>
    %107 = arith.addf %105, %106 : vector<16x128xf32>
    %108 = arith.negf %107 : vector<16x128xf32>
    %109 = math.exp %108 : vector<16x128xf32>
    %cst_53 = arith.constant 1.000000e+00 : f32
    %110 = vector.broadcast %cst_53 : f32 to vector<16x128xf32>
    %111 = arith.addf %110, %109 : vector<16x128xf32>
    %112 = arith.divf %110, %111 : vector<16x128xf32>
    %113 = vector.extract_strided_slice %100 {offsets = [0, 128], sizes = [16, 128], strides = [1, 1]} : vector<16x384xf32> to vector<16x128xf32>
    %114 = vector.extract_strided_slice %104 {offsets = [0, 128], sizes = [16, 128], strides = [1, 1]} : vector<16x256xf32> to vector<16x128xf32>
    %115 = arith.addf %113, %114 : vector<16x128xf32>
    %116 = arith.negf %115 : vector<16x128xf32>
    %117 = math.exp %116 : vector<16x128xf32>
    %cst_54 = arith.constant 1.000000e+00 : f32
    %118 = vector.broadcast %cst_54 : f32 to vector<16x128xf32>
    %119 = arith.addf %118, %117 : vector<16x128xf32>
    %120 = arith.divf %118, %119 : vector<16x128xf32>
    %121 = vector.extract_strided_slice %100 {offsets = [0, 256], sizes = [16, 128], strides = [1, 1]} : vector<16x384xf32> to vector<16x128xf32>
    %122 = arith.mulf %120, %101 : vector<16x128xf32>
    %c0_55 = arith.constant 0 : index
    %c0_56 = arith.constant 0 : index
    %123 = vector.load %arg4[%c0_55, %c0_56] : memref<128x128xf32, #tpu.memory_space<vmem>>, vector<128x128xf32>
    %cst_57 = arith.constant dense<0.000000e+00> : vector<16x128xf32>
    %124 = tpu.matmul %122, %123, %cst_57 {dimension_numbers = #tpu.dot_dimension_numbers<[1], [0], [0], [1], [0, 0, 1, 1], [], []>} : vector<16x128xf32>, vector<128x128xf32>, vector<16x128xf32> -> vector<16x128xf32>
    %cst_58 = arith.constant dense<0.000000e+00> : vector<16x128xf32>
    %125 = tpu.matmul %97, %124, %cst_58 {dimension_numbers = #tpu.dot_dimension_numbers<[1], [0], [0], [1], [0, 0, 1, 1], [], []>} : vector<16x16xf32>, vector<16x128xf32>, vector<16x128xf32> -> vector<16x128xf32>
    %126 = arith.addf %121, %125 : vector<16x128xf32>
    %127 = math.tanh %126 : vector<16x128xf32>
    %128 = vector.extract_strided_slice %101 {offsets = [0, 0], sizes = [1, 128], strides = [1, 1]} : vector<16x128xf32> to vector<1x128xf32>
    %129 = vector.broadcast %128 : vector<1x128xf32> to vector<16x128xf32>
    %130 = arith.mulf %112, %129 : vector<16x128xf32>
    %cst_59 = arith.constant 1.000000e+00 : f32
    %131 = vector.broadcast %cst_59 : f32 to vector<16x128xf32>
    %132 = arith.subf %131, %112 : vector<16x128xf32>
    %133 = arith.mulf %132, %127 : vector<16x128xf32>
    %134 = arith.addf %130, %133 : vector<16x128xf32>
    %c0_60 = arith.constant 0 : index
    %c0_61 = arith.constant 0 : index
    %135 = vector.load %arg6[%c0_60, %c0_61] : memref<16x128xf32, #tpu.memory_space<vmem>>, vector<16x128xf32>
    tpu.vector_store %arg6[%c0_60, %c0_61], %134 {strides = array<i32>} : memref<16x128xf32, #tpu.memory_space<vmem>>, vector<16x128xf32>,
    %136 = arith.index_cast %c2_i32 : i32 to index
    %c0_62 = arith.constant 0 : index
    %c0_63 = arith.constant 0 : index
    %137 = vector.load %arg5[%136, %c0_62, %c0_63] : memref<4x16x128xf32, #tpu.memory_space<vmem>>, vector<1x16x128xf32>
    %138 = vector.shape_cast %137 : vector<1x16x128xf32> to vector<16x128xf32>
    %139 = vector.shape_cast %134 : vector<16x128xf32> to vector<1x16x128xf32>
    tpu.vector_store %arg5[%136, %c0_62, %c0_63], %139 {strides = array<i32>} : memref<4x16x128xf32, #tpu.memory_space<vmem>>, vector<1x16x128xf32>,
    %c3_i32 = arith.constant 3 : i32
    %140 = arith.index_cast %c3_i32 : i32 to index
    %c0_64 = arith.constant 0 : index
    %c0_65 = arith.constant 0 : index
    %141 = vector.load %arg1[%140, %c0_64, %c0_65] : memref<4x16x16xbf16, #tpu.memory_space<vmem>>, vector<1x16x16xbf16>
    %142 = vector.shape_cast %141 : vector<1x16x16xbf16> to vector<16x16xbf16>
    %143 = arith.extf %142 : vector<16x16xbf16> to vector<16x16xf32>
    %144 = arith.index_cast %c3_i32 : i32 to index
    %c0_66 = arith.constant 0 : index
    %c0_67 = arith.constant 0 : index
    %145 = vector.load %arg2[%144, %c0_66, %c0_67] : memref<4x16x384xf32, #tpu.memory_space<vmem>>, vector<1x16x384xf32>
    %146 = vector.shape_cast %145 : vector<1x16x384xf32> to vector<16x384xf32>
    %c0_68 = arith.constant 0 : index
    %c0_69 = arith.constant 0 : index
    %147 = vector.load %arg6[%c0_68, %c0_69] : memref<16x128xf32, #tpu.memory_space<vmem>>, vector<16x128xf32>
    %c0_70 = arith.constant 0 : index
    %c0_71 = arith.constant 0 : index
    %148 = vector.load %arg3[%c0_70, %c0_71] : memref<128x256xf32, #tpu.memory_space<vmem>>, vector<128x256xf32>
    %cst_72 = arith.constant dense<0.000000e+00> : vector<16x256xf32>
    %149 = tpu.matmul %147, %148, %cst_72 {dimension_numbers = #tpu.dot_dimension_numbers<[1], [0], [0], [1], [0, 0, 1, 1], [], []>} : vector<16x128xf32>, vector<128x256xf32>, vector<16x256xf32> -> vector<16x256xf32>
    %cst_73 = arith.constant dense<0.000000e+00> : vector<16x256xf32>
    %150 = tpu.matmul %143, %149, %cst_73 {dimension_numbers = #tpu.dot_dimension_numbers<[1], [0], [0], [1], [0, 0, 1, 1], [], []>} : vector<16x16xf32>, vector<16x256xf32>, vector<16x256xf32> -> vector<16x256xf32>
    %151 = vector.extract_strided_slice %146 {offsets = [0, 0], sizes = [16, 128], strides = [1, 1]} : vector<16x384xf32> to vector<16x128xf32>
    %152 = vector.extract_strided_slice %150 {offsets = [0, 0], sizes = [16, 128], strides = [1, 1]} : vector<16x256xf32> to vector<16x128xf32>
    %153 = arith.addf %151, %152 : vector<16x128xf32>
    %154 = arith.negf %153 : vector<16x128xf32>
    %155 = math.exp %154 : vector<16x128xf32>
    %cst_74 = arith.constant 1.000000e+00 : f32
    %156 = vector.broadcast %cst_74 : f32 to vector<16x128xf32>
    %157 = arith.addf %156, %155 : vector<16x128xf32>
    %158 = arith.divf %156, %157 : vector<16x128xf32>
    %159 = vector.extract_strided_slice %146 {offsets = [0, 128], sizes = [16, 128], strides = [1, 1]} : vector<16x384xf32> to vector<16x128xf32>
    %160 = vector.extract_strided_slice %150 {offsets = [0, 128], sizes = [16, 128], strides = [1, 1]} : vector<16x256xf32> to vector<16x128xf32>
    %161 = arith.addf %159, %160 : vector<16x128xf32>
    %162 = arith.negf %161 : vector<16x128xf32>
    %163 = math.exp %162 : vector<16x128xf32>
    %cst_75 = arith.constant 1.000000e+00 : f32
    %164 = vector.broadcast %cst_75 : f32 to vector<16x128xf32>
    %165 = arith.addf %164, %163 : vector<16x128xf32>
    %166 = arith.divf %164, %165 : vector<16x128xf32>
    %167 = vector.extract_strided_slice %146 {offsets = [0, 256], sizes = [16, 128], strides = [1, 1]} : vector<16x384xf32> to vector<16x128xf32>
    %168 = arith.mulf %166, %147 : vector<16x128xf32>
    %c0_76 = arith.constant 0 : index
    %c0_77 = arith.constant 0 : index
    %169 = vector.load %arg4[%c0_76, %c0_77] : memref<128x128xf32, #tpu.memory_space<vmem>>, vector<128x128xf32>
    %cst_78 = arith.constant dense<0.000000e+00> : vector<16x128xf32>
    %170 = tpu.matmul %168, %169, %cst_78 {dimension_numbers = #tpu.dot_dimension_numbers<[1], [0], [0], [1], [0, 0, 1, 1], [], []>} : vector<16x128xf32>, vector<128x128xf32>, vector<16x128xf32> -> vector<16x128xf32>
    %cst_79 = arith.constant dense<0.000000e+00> : vector<16x128xf32>
    %171 = tpu.matmul %143, %170, %cst_79 {dimension_numbers = #tpu.dot_dimension_numbers<[1], [0], [0], [1], [0, 0, 1, 1], [], []>} : vector<16x16xf32>, vector<16x128xf32>, vector<16x128xf32> -> vector<16x128xf32>
    %172 = arith.addf %167, %171 : vector<16x128xf32>
    %173 = math.tanh %172 : vector<16x128xf32>
    %174 = vector.extract_strided_slice %147 {offsets = [0, 0], sizes = [1, 128], strides = [1, 1]} : vector<16x128xf32> to vector<1x128xf32>
    %175 = vector.broadcast %174 : vector<1x128xf32> to vector<16x128xf32>
    %176 = arith.mulf %158, %175 : vector<16x128xf32>
    %cst_80 = arith.constant 1.000000e+00 : f32
    %177 = vector.broadcast %cst_80 : f32 to vector<16x128xf32>
    %178 = arith.subf %177, %158 : vector<16x128xf32>
    %179 = arith.mulf %178, %173 : vector<16x128xf32>
    %180 = arith.addf %176, %179 : vector<16x128xf32>
    %c0_81 = arith.constant 0 : index
    %c0_82 = arith.constant 0 : index
    %181 = vector.load %arg6[%c0_81, %c0_82] : memref<16x128xf32, #tpu.memory_space<vmem>>, vector<16x128xf32>
    tpu.vector_store %arg6[%c0_81, %c0_82], %180 {strides = array<i32>} : memref<16x128xf32, #tpu.memory_space<vmem>>, vector<16x128xf32>,
    %182 = arith.index_cast %c3_i32 : i32 to index
    %c0_83 = arith.constant 0 : index
    %c0_84 = arith.constant 0 : index
    %183 = vector.load %arg5[%182, %c0_83, %c0_84] : memref<4x16x128xf32, #tpu.memory_space<vmem>>, vector<1x16x128xf32>
    %184 = vector.shape_cast %183 : vector<1x16x128xf32> to vector<16x128xf32>
    %185 = vector.shape_cast %180 : vector<16x128xf32> to vector<1x16x128xf32>
    tpu.vector_store %arg5[%182, %c0_83, %c0_84], %185 {strides = array<i32>} : memref<4x16x128xf32, #tpu.memory_space<vmem>>, vector<1x16x128xf32>,
    %c4_i32 = arith.constant 4 : i32
    return
  }
  func.func @transform_0(%arg0: i32) -> (i32, i32, i32) {
    %c0_i32 = arith.constant 0 : i32
    %c0_i32_0 = arith.constant 0 : i32
    %c0_i32_1 = arith.constant 0 : i32
    %c0_i32_2 = arith.constant 0 : i32
    return %c0_i32, %c0_i32_0, %c0_i32_1 : i32, i32, i32
  }
  func.func @transform_1(%arg0: i32) -> (i32, i32, i32) {
    %c0_i32 = arith.constant 0 : i32
    %c0_i32_0 = arith.constant 0 : i32
    %c0_i32_1 = arith.constant 0 : i32
    %c0_i32_2 = arith.constant 0 : i32
    return %c0_i32, %c0_i32_0, %c0_i32_1 : i32, i32, i32
  }
  func.func @transform_2(%arg0: i32) -> (i32, i32) {
    %c0_i32 = arith.constant 0 : i32
    %c0_i32_0 = arith.constant 0 : i32
    %c0_i32_1 = arith.constant 0 : i32
    return %c0_i32, %c0_i32_0 : i32, i32
  }
  func.func @transform_3(%arg0: i32) -> (i32, i32) {
    %c0_i32 = arith.constant 0 : i32
    %c0_i32_0 = arith.constant 0 : i32
    %c0_i32_1 = arith.constant 0 : i32
    return %c0_i32, %c0_i32_0 : i32, i32
  }
  func.func @transform_4(%arg0: i32) -> (i32, i32, i32) {
    %c0_i32 = arith.constant 0 : i32
    %c0_i32_0 = arith.constant 0 : i32
    %c0_i32_1 = arith.constant 0 : i32
    %c0_i32_2 = arith.constant 0 : i32
    return %c0_i32, %c0_i32_0, %c0_i32_1 : i32, i32, i32
  }
}

</mosaic_0001>

<bundles_post_ra>
// kernel: graph_gru_forward.2
= control target key start
LH: loop header
LB: loop body
LE: loop exit
PB: predicated region body
PF: predicated region fallthrough
CT: control target
= control target key end

     0   :  { %s615_s15 = smov 0   ;;  %s650_s0 = inlined_call_operand.vmem [shape: bf16[4,16,16], index: 0, kind: input, shape index: {}]   ;;  %s651_s1 = inlined_call_operand.vmem [shape: bf16[4,16,8], index: 1, kind: input, shape index: {}]   ;;  %s652_s2 = inlined_call_operand.vmem [shape: bf16[8,384], index: 2, kind: input, shape index: {}]   ;;  %s653_s3 = inlined_call_operand.vmem [shape: f32[1,384], index: 3, kind: input, shape index: {}]   ;;  %s654_s4 = inlined_call_operand.vmem [shape: f32[4,16,384], index: 4, kind: output, shape index: {}]  }
   0x1 LB: > { %s522_s16 = sadd.s32 4294967295, %s585_s15   ;;  %p526_p0 = scmp.ge.s32.totalorder %s585_s15, 1  ;;  %s585_s15 = sphi %s615_s15, %s14_s15  }
   0x2   : > { %p172_p1 = scmp.lt.s32.totalorder %s585_s15, 5 }
   0x4   : > { %p173_p2 = pnand %p526_p0, %p172_p1 }
   0x5   : > { %p203_p3 = scmp.lt.s32.totalorder (!%p173_p2), %s522_s16, 3 }
   0x6   : > { %176 = sbr.rel (%p173_p2) target bundleno = 425 (0x1a9), region = 36 }
   0xb   : > { %v221_v0 = vld [vmem:[%s652_s2] sm:$0xff]  ;;  %vm240_vm0 = vcmask 1043456   ;;  %v587_v2 = vmov 0.0   ;;  %v576_v4 = vld [vmem:[%s652_s2 + $0x8] ss:$0 sps:$4 sm:$0xff]   ;;  %v588_v5 = vmov 0   ;;  %v341_v21 = vlaneseq }
   0xc   : > { %v534_v1 = vcombine.high %v221_v0, %v221_v0  ;;  %550 = vmatprep.subr.bf16.mxu1 %v587_v2  ;;  %v533_v3 = vcombine.low %v221_v0, %v221_v0  ;;  %282 = vmatprep.mubr.bf16.mxu0 %v588_v5  ;;  %vm589_vm1 = vmmov 0   ;;  %v248_v7 = vsel %vm240_vm0, %v576_v4, 0  ;;  %s656_s16 = smov (!%p203_p3, %s522_s16), 3  ;;  %v339_v24 = vld [vmem:[%s653_s3] sm:$0x7] }
   0xd   : > { %552 = vmatprep.mubr.msk.bf16.mxu1 %vm589_vm1, %v587_v2  ;;  %551 = vmatpush3.bf16.msra.mxu1 %v248_v7  ;;  %s544_s21 = sshll.u32 %s656_s16, 3  ;;  %vm236_vm2 = vcmask 64512   ;;  %vm361_vm3 = vcmask 130048   ;;  %v342_v22 = vshrl.u32 %v341_v21, 7  ;;  %s562_s30 = smul.u32 48, %s656_s16 }
   0xe   : > { %536 = vmatprep.subr.msk.bf16.mxu0 %vm240_vm0, %v534_v1  ;;  %v242_v6 = vsel %vm240_vm0, %v533_v3, 0  ;;  %556 = vmatprep.subr.bf16.mxu1 %v587_v2  ;;  %s212_s24 = scalar_lea.vmem %s651_s1, %s544_s21  ;;  %s207_s27 = scalar_lea.vmem %s650_s0, %s544_s21 }
   0xf   : > { %265 = vmatpush1.bf16.msra.mxu0 %v242_v6  ;;  %v577_v8 = vld [vmem:[%s212_s24] sm:$0xff]   ;;  %v351_v23 = vsub.s32 2, %v342_v22  ;;  %v343_v25 = vsub.s32 0, %v342_v22  ;;  %v347_v27 = vsub.s32 1, %v342_v22  ;;  %s217_s7 = scalar_lea.vmem %s654_s4, %s562_s30 }
  0x10   : > { %553 = vmatmul.mubr.msk.bf16.vlgmr.msra.gmra.mxu1 %vm236_vm2, %v577_v8  ;;  %v578_v18 = vld [vmem:[%s207_s27] sm:$0xff]  }
  0x11   : > { %558 = vmatprep.mubr.msk.bf16.mxu1 %vm589_vm1, %v587_v2  ;;  %v352_v26 = vrot.slane %v339_v24, %v351_v23  ;;  %v344_v28 = vrot.slane %v339_v24, %v343_v25  ;;  %v348_v31 = vrot.slane %v339_v24, %v347_v27 }
  0x12   : > { %537 = vmatmul.mubr.msk.bf16.vlgmr.msra.gmra.mxu0 %vm236_vm2, %v577_v8 }
  0x13   : > { %397 = vmatprep.mubr.bf16.mxu0 %v588_v5 }
  0xd0   : > { %v327_v10 = vpop.f32.mrf.mxu1 }
  0xd2   : > { %v284_v9 = vpop.f32.mrf.mxu0  ;;  %v554_v12 = vpop.f32.mrf.mxu1 }
  0xd4   : > { %v286_v11 = vpop.f32.mrf.mxu0  ;;  %v330_v14 = vpop.f32.mrf.mxu1 }
  0xd5   : > { %v338_v15 = vpack.c.bf16 %v330_v14, %v327_v10 }
  0xd6   : > { %v288_v13 = vpop.f32.mrf.mxu0  ;;  %v555_v17 = vpop.f32.mrf.mxu1 }
  0xd7   : > { %557 = vmatpush3.bf16.msra.mxu1 %v338_v15  ;;  %v336_v20 = vpack.c.bf16 %v288_v13, %v284_v9 }
  0xd8   : > { %v290_v16 = vpop.f32.mrf.mxu0 }
  0xd9   : > { %v337_v19 = vpack.c.bf16 %v290_v16, %v286_v11 }
  0xda   : > { %559 = vmatmul.mubr.msk.bf16.vlgmr.msra.gmra.mxu1 %vm361_vm3, %v578_v18 }
  0xdb   : > { %379 = vmatprep.subr.bf16.mxu0 %v337_v19 }
  0xdc   : > { %380 = vmatpush1.bf16.msra.mxu0 %v336_v20 }
  0xdf   : > { %540 = vmatmul.mubr.msk.bf16.vlgmr.msra.gmra.mxu0 %vm361_vm3, %v578_v18 }
 0x19a   : > { %v442_v29 = vpop.f32.mrf.mxu1 }
 0x19b   : > { %v443_v30 = vadd.f32 %v442_v29, %v352_v26 }
 0x19c   : > { %v560_v32 = vpop.f32.mrf.mxu1 }
 0x19d   : > { %451 = vst [vmem:[%s217_s7 + $0x10] sm:$0xff] %v443_v30 }
 0x19e   : > { %v445_v35 = vpop.f32.mrf.mxu1 }
 0x19f   : > { %v399_v33 = vpop.f32.mrf.mxu0  ;;  %v446_v37 = vadd.f32 %v445_v35, %v352_v26 }
 0x1a0   : > { %v400_v34 = vadd.f32 %v399_v33, %v344_v28  ;;  %v561_v39 = vpop.f32.mrf.mxu1 }
 0x1a1   : > { %v401_v36 = vpop.f32.mrf.mxu0  ;;  %454 = vst [vmem:[%s217_s7 + $0x28] sm:$0xff] %v446_v37 }
 0x1a2   : > { %449 = vst [vmem:[%s217_s7] sm:$0xff] %v400_v34  ;;  %v402_v38 = vadd.f32 %v401_v36, %v348_v31 }
 0x1a3   : > { %v403_v40 = vpop.f32.mrf.mxu0 }
 0x1a4   : > { %450 = vst [vmem:[%s217_s7 + $0x8] sm:$0xff] %v402_v38  ;;  %v404_v41 = vadd.f32 %v403_v40, %v344_v28 }
 0x1a5   : > { %v405_v42 = vpop.f32.mrf.mxu0 }
 0x1a6   : > { %452 = vst [vmem:[%s217_s7 + $0x18] sm:$0xff] %v404_v41  ;;  %v406_v43 = vadd.f32 %v405_v42, %v348_v31 }
 0x1a8   : > { %453 = vst [vmem:[%s217_s7 + $0x20] sm:$0xff] %v406_v43 }
 0x1a9 PF: > { %s14_s15 = sadd.s32 1, %s585_s15  }
 0x1aa   : > { %p11_p4 = scmp.ge.s32.totalorder %s14_s15, 6  }
 0x1ac   :  { %13 = sbr.rel (!%p11_p4) target bundleno = 1 (0x1), region = 69 }

// kernel: graph_gru_forward.3
= control target key start
LH: loop header
LB: loop body
LE: loop exit
PB: predicated region body
PF: predicated region fallthrough
CT: control target
= control target key end

     0   :  { %v2979_v4 = vmov 0.0   ;;  %s2973_s0 = inlined_call_operand.vmem [shape: bf16[4,16,16], index: 0, kind: input, shape index: {}]   ;;  %s2974_s1 = inlined_call_operand.vmem [shape: f32[4,16,384], index: 1, kind: input, shape index: {}]   ;;  %s2975_s2 = inlined_call_operand.vmem [shape: f32[128,256], index: 2, kind: input, shape index: {}]   ;;  %s2976_s3 = inlined_call_operand.vmem [shape: f32[128,128], index: 3, kind: input, shape index: {}]   ;;  %s2977_s4 = inlined_call_operand.hbm [shape: f32[4,16,128], index: 4, kind: output, shape index: {}]  }
   0x1   :  { %v2195_v0 = vld [vmem:[%s2975_s2 + $0xf8] sm:$0xff]  ;;  %v2200_v1 = vld [vmem:[%s2975_s2 + $0xf0] sm:$0xff]  ;;  %v2205_v2 = vld [vmem:[%s2975_s2 + $0xe8] sm:$0xff]  ;;  %128 = vmatprep.mubr.f32.mxu0 %v2979_v4  ;;  %212 = vmatprep.mubr.f32.mxu1 %v2979_v4 }
   0x2   :  { %2989 = vst [vmem:[#allocation6_spill] sm:$0xff] %v2195_v0  ;;  %64 = vmatprep.subr.mxu0 %v2195_v0  ;;  %v2211_v3 = vld [vmem:[%s2975_s2 + $0xe0] sm:$0xff]  ;;  %v2218_v5 = vld [vmem:[%s2975_s2 + $0xd8] sm:$0xff]  ;;  %v2225_v6 = vld [vmem:[%s2975_s2 + $0xd0] sm:$0xff] }
   0x3   :  { %65 = vmatpush1.msra.mxu0 %v2200_v1  ;;  %v2231_v7 = vld [vmem:[%s2975_s2 + $0xc8] sm:$0xff]  ;;  %v2237_v8 = vld [vmem:[%s2975_s2 + $0xc0] sm:$0xff]  ;;  %v2243_v9 = vld [vmem:[%s2975_s2 + $0xb8] sm:$0xff] }
   0x4   :  { %66 = vmatprep.subr.mxu0 %v2205_v2  ;;  %v2249_v10 = vld [vmem:[%s2975_s2 + $0xb0] sm:$0xff]  ;;  %v2255_v11 = vld [vmem:[%s2975_s2 + $0xa8] sm:$0xff]  ;;  %v2261_v12 = vld [vmem:[%s2975_s2 + $0xa0] sm:$0xff] }
   0x5   :  { %67 = vmatpush1.msra.mxu0 %v2211_v3  ;;  %v2267_v13 = vld [vmem:[%s2975_s2 + $0x98] sm:$0xff] }
   0x6   :  { %68 = vmatprep.subr.mxu0 %v2218_v5 }
   0x7   :  { %69 = vmatpush1.msra.mxu0 %v2225_v6 }
   0x8   :  { %70 = vmatprep.subr.mxu0 %v2231_v7 }
   0x9   :  { %71 = vmatpush1.msra.mxu0 %v2237_v8 }
   0xa   :  { %72 = vmatprep.subr.mxu0 %v2243_v9 }
   0xb   :  { %73 = vmatpush1.msra.mxu0 %v2249_v10 }
   0xc   :  { %9 = vsyncpa [#allocation4], 0  ;;  %74 = vmatprep.subr.mxu0 %v2255_v11  ;;  %v2273_v14 = vld [vmem:[%s2975_s2 + $0x90] sm:$0xff]  ;;  %v2279_v15 = vld [vmem:[%s2975_s2 + $0x88] sm:$0xff]  ;;  %vm141_vm0 = vcmask 130048   ;;  %s2164_s24 = smov [#allocation3]  }
   0xd   :  { %75 = vmatpush1.msra.mxu0 %v2261_v12  ;;  %v2285_v16 = vld [vmem:[%s2975_s2 + $0x80] sm:$0xff]  ;;  %v2291_v17 = vld [vmem:[%s2975_s2 + $0x78] sm:$0xff]  ;;  %v2297_v18 = vld [vmem:[%s2975_s2 + $0x70] sm:$0xff]  ;;  %s1715_s25 = sshll.u32 %s2164_s24, 4  ;;  %s1716_s25 = int_to_ptr.vmem [resolvable:$true] %s1715_s25 }
   0xe   :  { %76 = vmatprep.subr.mxu0 %v2267_v13  ;;  %v2303_v19 = vld [vmem:[%s2975_s2 + $0x68] sm:$0xff]  ;;  %v2309_v20 = vld [vmem:[%s2975_s2 + $0x60] sm:$0xff]  ;;  %v2315_v21 = vld [vmem:[%s2975_s2 + $0x58] sm:$0xff]  ;;  %p2146_p1 = scmp.lt.s32.totalorder %s1716_s25, %s1716_s25 }
   0xf   :  { %77 = vmatpush1.msra.mxu0 %v2273_v14  ;;  %v2321_v22 = vld [vmem:[%s2975_s2 + $0x50] sm:$0xff]  ;;  %v2327_v23 = vld [vmem:[%s2975_s2 + $0x48] sm:$0xff]  ;;  %v2333_v24 = vld [vmem:[%s2975_s2 + $0x40] sm:$0xff] }
  0x10   :  { %78 = vmatprep.subr.mxu0 %v2279_v15  ;;  %v2339_v25 = vld [vmem:[%s2975_s2 + $0x38] sm:$0xff]  ;;  %v2345_v26 = vld [vmem:[%s2975_s2 + $0x30] sm:$0xff]  ;;  %v2351_v27 = vld [vmem:[%s2975_s2 + $0x28] sm:$0xff] }
  0x11   :  { %79 = vmatpush1.msra.mxu0 %v2285_v16  ;;  %v2357_v28 = vld [vmem:[%s2975_s2 + $0x20] sm:$0xff]  ;;  %v2363_v29 = vld [vmem:[%s2975_s2 + $0x18] sm:$0xff]  ;;  %v2369_v30 = vld [vmem:[%s2975_s2 + $0x10] sm:$0xff] }
  0x12   :  { %80 = vmatprep.subr.mxu0 %v2291_v17  ;;  %v2375_v31 = vld [vmem:[%s2975_s2 + $0x8] sm:$0xff]  ;;  %v2381_v32 = vld [vmem:[%s2975_s2] sm:$0xff]  ;;  %v2405_v40 = vld [vmem:[%s2976_s3 + $0x78] sm:$0xff] }
  0x13   :  { %81 = vmatpush1.msra.mxu0 %v2297_v18  ;;  %2990 = vst [vmem:[#allocation7_spill] sm:$0xff] %v2375_v31  ;;  %2991 = vst [vmem:[#allocation8_spill] sm:$0xff] %v2381_v32  ;;  %v2392_v33 = vld [vmem:[%s2973_s0] sm:$0xff]   ;;  %v2412_v41 = vld [vmem:[%s2976_s3 + $0x70] sm:$0xff] }
  0x14   :  { %82 = vmatprep.subr.mxu0 %v2303_v19  ;;  %v1784_v34 = vunpack.c.l.bf16 %v2392_v33  ;;  %v2978_v39 = vunpack.c.h.bf16 %v2392_v33  ;;  %v2419_v42 = vld [vmem:[%s2976_s3 + $0x68] sm:$0xff]  ;;  %v2426_v43 = vld [vmem:[%s2976_s3 + $0x60] sm:$0xff]  ;;  %v2433_v44 = vld [vmem:[%s2976_s3 + $0x58] sm:$0xff] }
  0x15   :  { %83 = vmatpush1.msra.mxu0 %v2309_v20  ;;  %v2440_v45 = vld [vmem:[%s2976_s3 + $0x50] sm:$0xff]  ;;  %v2447_v46 = vld [vmem:[%s2976_s3 + $0x48] sm:$0xff]  ;;  %v2454_v47 = vld [vmem:[%s2976_s3 + $0x40] sm:$0xff] }
  0x16   :  { %84 = vmatprep.subr.mxu0 %v2315_v21  ;;  %v2461_v48 = vld [vmem:[%s2976_s3 + $0x38] sm:$0xff]  ;;  %v2468_v49 = vld [vmem:[%s2976_s3 + $0x30] sm:$0xff]  ;;  %v2475_v50 = vld [vmem:[%s2976_s3 + $0x28] sm:$0xff] }
  0x17   :  { %85 = vmatpush1.msra.mxu0 %v2321_v22  ;;  %v2482_v51 = vld [vmem:[%s2976_s3 + $0x20] sm:$0xff]  ;;  %v2489_v52 = vld [vmem:[%s2976_s3 + $0x18] sm:$0xff]  ;;  %v2496_v53 = vld [vmem:[%s2976_s3 + $0x10] sm:$0xff] }
  0x18   :  { %86 = vmatprep.subr.mxu0 %v2327_v23  ;;  %v2503_v54 = vld [vmem:[%s2976_s3 + $0x8] sm:$0xff]  ;;  %v2510_v55 = vld [vmem:[%s2976_s3] sm:$0xff] }
  0x19   :  { %87 = vmatpush1.msra.mxu0 %v2333_v24  ;;  %2992 = vst [vmem:[#allocation9_spill] sm:$0xff] %v2503_v54  ;;  %2993 = vst [vmem:[#allocation10_spill] sm:$0xff] %v2510_v55  ;;  %v25_v57 = vld [vmem:[%s2974_s1 + $0x8] sm:$0xff]  ;;  %v28_v61 = vld [vmem:[%s2974_s1 + $0x20] sm:$0xff] }
  0x1a   :  { %88 = vmatprep.subr.mxu0 %v2339_v25 }
  0x1b   :  { %89 = vmatpush1.msra.mxu0 %v2345_v26 }
  0x1c   :  { %90 = vmatprep.subr.mxu0 %v2351_v27 }
  0x1d   :  { %91 = vmatpush1.msra.mxu0 %v2357_v28 }
  0x1e   :  { %92 = vmatprep.subr.mxu0 %v2363_v29 }
  0x1f   :  { %93 = vmatpush1.msra.mxu0 %v2369_v30 }
  0x20   :  { %94 = vmatprep.subr.mxu0 %v2375_v31 }
  0x21   :  { %95 = vmatpush1.msra.mxu0 %v2381_v32 }
  0x22   :  { %129 = vmatmul.mubr.f32.vlgmr.msra.gmra.mxu0 %v2979_v4 }
  0x23   :  { %134 = vmatprep.mubr.f32.mxu0 %v2979_v4 }
  0x26   :  { %135 = vmatmul.mubr.f32.gmra.mxu0 %v2979_v4 }
  0x27   :  { %1928 = vmatprep.mubr.msk.f32.mxu0 %vm141_vm0, %v1784_v34 }
  0xe2   :  { %v130_v35 = vpop.f32.mrf.mxu0 }
  0xe4   :  { %v132_v36 = vpop.f32.mrf.mxu0 }
  0xe6   :  { %v136_v37 = vpop.f32.mrf.mxu0 }
  0xe8   :  { %v138_v38 = vpop.f32.mrf.mxu0 }
  0xe9   :  { %176 = vmatprep.subr.mxu1 %v138_v38 }
  0xea   :  { %177 = vmatpush1.msra.mxu1 %v136_v37 }
  0xeb   :  { %178 = vmatprep.subr.mxu1 %v132_v36 }
  0xec   :  { %179 = vmatpush1.msra.mxu1 %v130_v35 }
  0xed   :  { %1726 = vmatmul.mubr.msk.f32.vlgmr.msra.gmra.mxu1 %vm141_vm0, %v1784_v34  ;;  %1889 = vmatprep.subr.mxu1 %v2405_v40 }
  0xee   :  { %218 = vmatprep.mubr.f32.mxu1 %v2979_v4  ;;  %1890 = vmatpush3.msra.mxu1 %v2405_v40 }
  0xef   :  { %1891 = vmatprep.subr.mxu1 %v2412_v41 }
  0xf0   :  { %1892 = vmatpush3.msra.mxu1 %v2412_v41 }
  0xf1   :  { %1727 = vmatmul.mubr.msk.f32.gmra.mxu1 %vm141_vm0, %v2978_v39  ;;  %1893 = vmatprep.subr.mxu1 %v2419_v42 }
  0xf2   :  { %1894 = vmatpush3.msra.mxu1 %v2419_v42 }
  0xf3   :  { %1895 = vmatprep.subr.mxu1 %v2426_v43 }
  0xf4   :  { %1896 = vmatpush3.msra.mxu1 %v2426_v43 }
  0xf5   :  { %1897 = vmatprep.subr.mxu1 %v2433_v44 }
  0xf6   :  { %1898 = vmatpush3.msra.mxu1 %v2433_v44 }
  0xf7   :  { %1899 = vmatprep.subr.mxu1 %v2440_v45 }
  0xf8   :  { %1900 = vmatpush3.msra.mxu1 %v2440_v45 }
  0xf9   :  { %1901 = vmatprep.subr.mxu1 %v2447_v46 }
  0xfa   :  { %1902 = vmatpush3.msra.mxu1 %v2447_v46 }
  0xfb   :  { %1903 = vmatprep.subr.mxu1 %v2454_v47 }
  0xfc   :  { %1904 = vmatpush3.msra.mxu1 %v2454_v47 }
  0xfd   :  { %1905 = vmatprep.subr.mxu1 %v2461_v48 }
  0xfe   :  { %1906 = vmatpush3.msra.mxu1 %v2461_v48 }
  0xff   :  { %1907 = vmatprep.subr.mxu1 %v2468_v49 }
 0x100   :  { %1908 = vmatpush3.msra.mxu1 %v2468_v49 }
 0x101   :  { %1909 = vmatprep.subr.mxu1 %v2475_v50 }
 0x102   :  { %1910 = vmatpush3.msra.mxu1 %v2475_v50 }
 0x103   :  { %1911 = vmatprep.subr.mxu1 %v2482_v51 }
 0x104   :  { %1912 = vmatpush3.msra.mxu1 %v2482_v51 }
 0x105   :  { %1913 = vmatprep.subr.mxu1 %v2489_v52 }
 0x106   :  { %1914 = vmatpush3.msra.mxu1 %v2489_v52 }
 0x107   :  { %1915 = vmatprep.subr.mxu1 %v2496_v53 }
 0x108   :  { %1916 = vmatpush3.msra.mxu1 %v2496_v53 }
 0x109   :  { %1917 = vmatprep.subr.mxu1 %v2503_v54 }
 0x10a   :  { %1918 = vmatpush3.msra.mxu1 %v2503_v54 }
 0x10b   :  { %1919 = vmatprep.subr.mxu1 %v2510_v55 }
 0x10c   :  { %1920 = vmatpush3.msra.mxu1 %v2510_v55 }
 0x10d   :  { %487 = vmatprep.subr.mxu1 %v2195_v0 }
 0x1ad   :  { %v2515_v56 = vpop.f32.mrf.mxu1 }
 0x1af   :  { %v216_v58 = vpop.f32.mrf.mxu1 }
 0x1b0   :  { %v239_v59 = vadd.f32 %v216_v58, %v25_v57 }
 0x1b1   :  { %v220_v60 = vpop.f32.mrf.mxu1 }
 0x1b2   :  { %v1730_v62 = vmul.f32 -1.442695, %v239_v59  ;;  %v2994_v59 = vmov 0.0  }
 0x1b3   :  { %v222_v63 = vpop.f32.mrf.mxu1 }
 0x1b4   :  { %2061 = vpow2.f32 %v1730_v62  ;;  %v240_v34 = vadd.f32 %v222_v63, %v28_v61  ;;  %v27_v61 = vld [vmem:[%s2974_s1 + $0x18] sm:$0xff]  ;;  %v24_v62 = vld [vmem:[%s2974_s1] sm:$0xff] }
 0x1b5   :  { %v226_v63 = vadd.f32 %v220_v60, %v27_v61  ;;  %v26_v60 = vld [vmem:[%s2974_s1 + $0x10] sm:$0xff]  ;;  %v425_v61 = vlaneseq }
 0x1b6   :  { %v1731_v35 = vmul.f32 -1.442695, %v240_v34  ;;  %v225_v34 = vadd.f32 %v2515_v56, %v24_v62 }
 0x1b7   :  { %v426_v62 = vshrl.u32 %v425_v61, 7 }
 0x1b8   :  { %2063 = vpow2.f32 %v1731_v35  ;;  %v1729_v35 = vmul.f32 -1.442695, %v226_v63 }
 0x1b9   :  { %v2572_v63 = vsub.s32 0, %v426_v62 }
 0x1c1   :  { %v2062_v36 = vpop.eup %2061 }
 0x1c2   :  { %v247_v37 = vadd.f32 1.0, %v2062_v36  ;;  %v1728_v36 = vmul.f32 -1.442695, %v225_v34 }
 0x1c4   :  { %2065 = vrcp.f32 %v247_v37 }
 0x1c5   :  { %v2064_v38 = vpop.eup %2063 }
 0x1c6   :  { %v248_v39 = vadd.f32 1.0, %v2064_v38 }
 0x1c8   :  { %2067 = vrcp.f32 %v248_v39  ;;  %v2995_v39 = vunpack.c.h.bf16 %v2392_v33 }
 0x1c9   :  { %2069 = vpow2.f32 %v1729_v35 }
 0x1ca   :  { %2071 = vpow2.f32 %v1728_v36  ;;  %v428_v36 = vrot.slane %v2994_v59, %v2572_v63 }
 0x1d1   :  { %v2066_v4 = vpop.eup %2065 }
 0x1d2   :  { %v253_v0 = vmul.f32 0.0, %v2066_v4 }
 0x1d4   :  { %1921 = vmatprep.mubr.f32.mxu1 %v253_v0 }
 0x1d5   :  { %v2068_v57 = vpop.eup %2067 }
 0x1d6   :  { %v254_v58 = vmul.f32 0.0, %v2068_v57  ;;  %v2070_v33 = vpop.eup %2069 }
 0x1d7   :  { %v2072_v37 = vpop.eup %2071  ;;  %v234_v38 = vadd.f32 1.0, %v2070_v33 }
 0x1d8   :  { %1922 = vmatmul.mubr.f32.vlgmr.msra.gmra.mxu1 %v254_v58  ;;  %v233_v57 = vadd.f32 1.0, %v2072_v37  ;;  %v29_v58 = vld [vmem:[%s2974_s1 + $0x28] sm:$0xff] }
 0x1d9   :  { %488 = vmatpush1.msra.mxu1 %v2200_v1  ;;  %551 = vmatprep.mubr.f32.mxu1 %v2994_v59  ;;  %2073 = vrcp.f32 %v234_v38 }
 0x1da   :  { %489 = vmatprep.subr.mxu1 %v2205_v2  ;;  %2075 = vrcp.f32 %v233_v57 }
 0x1db   :  { %490 = vmatpush1.msra.mxu1 %v2211_v3 }
 0x1dc   :  { %491 = vmatprep.subr.mxu1 %v2218_v5 }
 0x1dd   :  { %492 = vmatpush1.msra.mxu1 %v2225_v6 }
 0x1de   :  { %493 = vmatprep.subr.mxu1 %v2231_v7 }
 0x1df   :  { %494 = vmatpush1.msra.mxu1 %v2237_v8 }
 0x1e0   :  { %495 = vmatprep.subr.mxu1 %v2243_v9 }
 0x1e1   :  { %496 = vmatpush1.msra.mxu1 %v2249_v10 }
 0x1e2   :  { %497 = vmatprep.subr.mxu1 %v2255_v11 }
 0x1e3   :  { %498 = vmatpush1.msra.mxu1 %v2261_v12 }
 0x1e4   :  { %499 = vmatprep.subr.mxu1 %v2267_v13 }
 0x1e5   :  { %500 = vmatpush1.msra.mxu1 %v2273_v14 }
 0x1e6   :  { %501 = vmatprep.subr.mxu1 %v2279_v15  ;;  %v2074_v34 = vpop.eup %2073 }
 0x1e7   :  { %502 = vmatpush1.msra.mxu1 %v2285_v16  ;;  %v2076_v35 = vpop.eup %2075  ;;  %v432_v33 = vsub.f32 1.0, %v2074_v34 }
 0x1e8   :  { %503 = vmatprep.subr.mxu1 %v2291_v17  ;;  %v431_v38 = vsub.f32 1.0, %v2076_v35 }
 0x1e9   :  { %504 = vmatpush1.msra.mxu1 %v2297_v18 }
 0x1ea   :  { %505 = vmatprep.subr.mxu1 %v2303_v19 }
 0x1eb   :  { %506 = vmatpush1.msra.mxu1 %v2309_v20 }
 0x1ec   :  { %507 = vmatprep.subr.mxu1 %v2315_v21 }
 0x1ed   :  { %508 = vmatpush1.msra.mxu1 %v2321_v22 }
 0x1ee   :  { %509 = vmatprep.subr.mxu1 %v2327_v23 }
 0x1ef   :  { %510 = vmatpush1.msra.mxu1 %v2333_v24 }
 0x1f0   :  { %511 = vmatprep.subr.mxu1 %v2339_v25 }
 0x1f1   :  { %512 = vmatpush1.msra.mxu1 %v2345_v26 }
 0x1f2   :  { %513 = vmatprep.subr.mxu1 %v2351_v27 }
 0x1f3   :  { %514 = vmatpush1.msra.mxu1 %v2357_v28 }
 0x1f4   :  { %515 = vmatprep.subr.mxu1 %v2363_v29 }
 0x1f5   :  { %516 = vmatpush1.msra.mxu1 %v2369_v30 }
 0x1f6   :  { %517 = vmatprep.subr.mxu1 %v2375_v31 }
 0x1f7   :  { %518 = vmatpush1.msra.mxu1 %v2381_v32  ;;  %v430_v32 = vmul.f32 %v2074_v34, %v428_v36 }
 0x298   :  { %v1923_v0 = vpop.f32.mrf.mxu1 }
 0x299   :  { %1924 = vmatprep.subr.mxu0 %v1923_v0 }
 0x29a   :  { %v337_v4 = vpop.f32.mrf.mxu1  ;;  %1925 = vmatpush3.msra.mxu0 %v1923_v0 }
 0x29b   :  { %1926 = vmatprep.subr.mxu0 %v337_v4 }
 0x29c   :  { %1927 = vmatpush3.msra.mxu0 %v337_v4 }
 0x29d   :  { %1929 = vmatmul.mubr.msk.f32.vlgmr.msra.gmra.mxu0 %vm141_vm0, %v2995_v39 }
 0x29e   :  { %634 = vmatprep.mubr.f32.mxu0 %v2994_v59 }
 0x35d   :  { %v1930_v0 = vpop.f32.mrf.mxu0 }
 0x35e   :  { %v422_v56 = vadd.f32 %v1930_v0, %v29_v58  ;;  %v429_v58 = vmul.f32 %v2076_v35, %v428_v36  ;;  %v2996_v35 = vld [vmem:[#allocation6_spill] sm:$0xff] }
 0x35f   :  { %v412_v4 = vpop.f32.mrf.mxu0 }
 0x360   :  { %2077 = vtanh.f32 %v422_v56  ;;  %v421_v39 = vadd.f32 %v412_v4, %v26_v60  ;;  %v2588_v4 = vld [vmem:[%s2973_s0 + $0x8] sm:$0xff]  }
 0x361   :  { %v2984_v34 = vunpack.c.h.bf16 %v2588_v4 }
 0x362   :  { %2079 = vtanh.f32 %v421_v39 }
 0x36d   :  { %v2078_v37 = vpop.eup %2077 }
 0x36e   :  { %v434_v31 = vmul.f32 %v2078_v37, %v432_v33  ;;  %v1737_v33 = vld [vmem:[%s2974_s1 + $0x38] sm:$0xff] }
 0x36f   :  { %v2080_v57 = vpop.eup %2079 }
 0x370   :  { %v433_v0 = vmul.f32 %v2080_v57, %v431_v38  ;;  %v2576_v56 = vadd.f32 %v434_v31, %v430_v32  ;;  %v1788_v31 = vunpack.c.l.bf16 %v2588_v4 }
 0x372   :  { %v2578_v60 = vadd.f32 %v433_v0, %v429_v58  ;;  %440 = vst [vmem:[#allocation3 + $0x8] sm:$0xff] %v2576_v56  ;;  %v1740_v58 = vld [vmem:[%s2974_s1 + $0x50] sm:$0xff] }
 0x374   :  { %439 = vst [vmem:[#allocation3] sm:$0xff] %v2578_v60  ;;  %552 = vmatmul.mubr.f32.vlgmr.msra.gmra.mxu1 %v2578_v60 }
 0x375   :  { %557 = vmatprep.mubr.f32.mxu1 %v2994_v59 }
 0x378   :  { %558 = vmatmul.mubr.f32.gmra.mxu1 %v2576_v56 }
 0x379   :  { %1970 = vmatprep.mubr.msk.f32.mxu1 %vm141_vm0, %v1788_v31 }
 0x434   :  { %v553_v32 = vpop.f32.mrf.mxu1 }
 0x436   :  { %v555_v39 = vpop.f32.mrf.mxu1 }
 0x438   :  { %v559_v61 = vpop.f32.mrf.mxu1 }
 0x43a   :  { %v561_v62 = vpop.f32.mrf.mxu1 }
 0x43b   :  { %598 = vmatprep.subr.mxu0 %v561_v62 }
 0x43c   :  { %599 = vmatpush1.msra.mxu0 %v559_v61 }
 0x43d   :  { %600 = vmatprep.subr.mxu0 %v555_v39 }
 0x43e   :  { %601 = vmatpush1.msra.mxu0 %v553_v32 }
 0x43f   :  { %1742 = vmatmul.mubr.msk.f32.vlgmr.msra.gmra.mxu0 %vm141_vm0, %v1788_v31  ;;  %1931 = vmatprep.subr.mxu0 %v2405_v40 }
 0x440   :  { %640 = vmatprep.mubr.f32.mxu0 %v2994_v59  ;;  %1932 = vmatpush3.msra.mxu0 %v2405_v40 }
 0x441   :  { %1933 = vmatprep.subr.mxu0 %v2412_v41 }
 0x442   :  { %1934 = vmatpush3.msra.mxu0 %v2412_v41 }
 0x443   :  { %1743 = vmatmul.mubr.msk.f32.gmra.mxu0 %vm141_vm0, %v2984_v34  ;;  %1935 = vmatprep.subr.mxu0 %v2419_v42 }
 0x444   :  { %1936 = vmatpush3.msra.mxu0 %v2419_v42 }
 0x445   :  { %1937 = vmatprep.subr.mxu0 %v2426_v43 }
 0x446   :  { %1938 = vmatpush3.msra.mxu0 %v2426_v43 }
 0x447   :  { %1939 = vmatprep.subr.mxu0 %v2433_v44 }
 0x448   :  { %1940 = vmatpush3.msra.mxu0 %v2433_v44 }
 0x449   :  { %1941 = vmatprep.subr.mxu0 %v2440_v45 }
 0x44a   :  { %1942 = vmatpush3.msra.mxu0 %v2440_v45 }
 0x44b   :  { %1943 = vmatprep.subr.mxu0 %v2447_v46 }
 0x44c   :  { %1944 = vmatpush3.msra.mxu0 %v2447_v46 }
 0x44d   :  { %1945 = vmatprep.subr.mxu0 %v2454_v47 }
 0x44e   :  { %1946 = vmatpush3.msra.mxu0 %v2454_v47 }
 0x44f   :  { %1947 = vmatprep.subr.mxu0 %v2461_v48 }
 0x450   :  { %1948 = vmatpush3.msra.mxu0 %v2461_v48 }
 0x451   :  { %1949 = vmatprep.subr.mxu0 %v2468_v49 }
 0x452   :  { %1950 = vmatpush3.msra.mxu0 %v2468_v49 }
 0x453   :  { %1951 = vmatprep.subr.mxu0 %v2475_v50 }
 0x454   :  { %1952 = vmatpush3.msra.mxu0 %v2475_v50 }
 0x455   :  { %1953 = vmatprep.subr.mxu0 %v2482_v51 }
 0x456   :  { %1954 = vmatpush3.msra.mxu0 %v2482_v51 }
 0x457   :  { %1955 = vmatprep.subr.mxu0 %v2489_v52 }
 0x458   :  { %1956 = vmatpush3.msra.mxu0 %v2489_v52 }
 0x459   :  { %1957 = vmatprep.subr.mxu0 %v2496_v53 }
 0x45a   :  { %1958 = vmatpush3.msra.mxu0 %v2496_v53 }
 0x45b   :  { %1959 = vmatprep.subr.mxu0 %v2503_v54 }
 0x45c   :  { %1960 = vmatpush3.msra.mxu0 %v2503_v54 }
 0x45d   :  { %1961 = vmatprep.subr.mxu0 %v2510_v55 }
 0x45e   :  { %1962 = vmatpush3.msra.mxu0 %v2510_v55 }
 0x45f   :  { %910 = vmatprep.subr.mxu0 %v2996_v35 }
 0x4ff   :  { %v2631_v36 = vpop.f32.mrf.mxu0 }
 0x501   :  { %v638_v37 = vpop.f32.mrf.mxu0 }
 0x502   :  { %v661_v38 = vadd.f32 %v1737_v33, %v638_v37 }
 0x503   :  { %v642_v57 = vpop.f32.mrf.mxu0 }
 0x504   :  { %v1746_v0 = vmul.f32 -1.442695, %v661_v38 }
 0x505   :  { %v644_v31 = vpop.f32.mrf.mxu0 }
 0x506   :  { %2081 = vpow2.f32 %v1746_v0  ;;  %v662_v32 = vadd.f32 %v1740_v58, %v644_v31 }
 0x508   :  { %v1747_v39 = vmul.f32 -1.442695, %v662_v32 }
 0x50a   :  { %2083 = vpow2.f32 %v1747_v39 }
 0x513   :  { %v2082_v61 = vpop.eup %2081 }
 0x514   :  { %v669_v62 = vadd.f32 1.0, %v2082_v61 }
 0x516   :  { %2085 = vrcp.f32 %v669_v62 }
 0x517   :  { %v2084_v35 = vpop.eup %2083 }
 0x518   :  { %v670_v34 = vadd.f32 1.0, %v2084_v35 }
 0x51a   :  { %2087 = vrcp.f32 %v670_v34 }
 0x523   :  { %v2086_v55 = vpop.eup %2085 }
 0x524   :  { %v675_v33 = vmul.f32 %v2086_v55, %v2578_v60 }
 0x526   :  { %1963 = vmatprep.mubr.f32.mxu0 %v675_v33 }
 0x527   :  { %v2088_v37 = vpop.eup %2087 }
 0x528   :  { %v676_v54 = vmul.f32 %v2088_v37, %v2576_v56  ;;  %v1332_v37 = vld [vmem:[%s2975_s2 + $0xf8] sm:$0xff] }
 0x52a   :  { %1964 = vmatmul.mubr.f32.vlgmr.msra.gmra.mxu0 %v676_v54 }
 0x52b   :  { %911 = vmatpush1.msra.mxu0 %v2200_v1  ;;  %974 = vmatprep.mubr.f32.mxu0 %v2994_v59  ;;  %v2997_v1 = vld [vmem:[#allocation7_spill] sm:$0xff] }
 0x52c   :  { %912 = vmatprep.subr.mxu0 %v2205_v2  ;;  %v2998_v2 = vld [vmem:[#allocation8_spill] sm:$0xff] }
 0x52d   :  { %913 = vmatpush1.msra.mxu0 %v2211_v3 }
 0x52e   :  { %914 = vmatprep.subr.mxu0 %v2218_v5 }
 0x52f   :  { %915 = vmatpush1.msra.mxu0 %v2225_v6  ;;  %v2999_v6 = vunpack.c.h.bf16 %v2588_v4 }
 0x530   :  { %916 = vmatprep.subr.mxu0 %v2231_v7  ;;  %v1739_v7 = vld [vmem:[%s2974_s1 + $0x48] sm:$0xff] }
 0x531   :  { %917 = vmatpush1.msra.mxu0 %v2237_v8  ;;  %v1736_v8 = vld [vmem:[%s2974_s1 + $0x30] sm:$0xff] }
 0x532   :  { %918 = vmatprep.subr.mxu0 %v2243_v9  ;;  %v648_v9 = vadd.f32 %v1739_v7, %v642_v57  ;;  %v1326_v7 = vld [vmem:[%s2975_s2 + $0xc8] sm:$0xff] }
 0x533   :  { %919 = vmatpush1.msra.mxu0 %v2249_v10  ;;  %v647_v10 = vadd.f32 %v1736_v8, %v2631_v36  ;;  %v1325_v8 = vld [vmem:[%s2975_s2 + $0xc0] sm:$0xff] }
 0x534   :  { %920 = vmatprep.subr.mxu0 %v2255_v11  ;;  %v1745_v11 = vmul.f32 -1.442695, %v648_v9  ;;  %v1324_v9 = vld [vmem:[%s2975_s2 + $0xb8] sm:$0xff] }
 0x535   :  { %921 = vmatpush1.msra.mxu0 %v2261_v12  ;;  %v1744_v12 = vmul.f32 -1.442695, %v647_v10 }
 0x536   :  { %922 = vmatprep.subr.mxu0 %v2267_v13  ;;  %2089 = vpow2.f32 %v1745_v11 }
 0x537   :  { %923 = vmatpush1.msra.mxu0 %v2273_v14  ;;  %2091 = vpow2.f32 %v1744_v12  ;;  %v1323_v12 = vld [vmem:[%s2975_s2 + $0xb0] sm:$0xff] }
 0x538   :  { %924 = vmatprep.subr.mxu0 %v2279_v15 }
 0x539   :  { %925 = vmatpush1.msra.mxu0 %v2285_v16 }
 0x53a   :  { %926 = vmatprep.subr.mxu0 %v2291_v17  ;;  %v1741_v17 = vld [vmem:[%s2974_s1 + $0x58] sm:$0xff] }
 0x53b   :  { %927 = vmatpush1.msra.mxu0 %v2297_v18 }
 0x53c   :  { %928 = vmatprep.subr.mxu0 %v2303_v19  ;;  %v1738_v19 = vld [vmem:[%s2974_s1 + $0x40] sm:$0xff] }
 0x53d   :  { %929 = vmatpush1.msra.mxu0 %v2309_v20 }
 0x53e   :  { %930 = vmatprep.subr.mxu0 %v2315_v21 }
 0x53f   :  { %931 = vmatpush1.msra.mxu0 %v2321_v22 }
 0x540   :  { %932 = vmatprep.subr.mxu0 %v2327_v23 }
 0x541   :  { %933 = vmatpush1.msra.mxu0 %v2333_v24 }
 0x542   :  { %934 = vmatprep.subr.mxu0 %v2339_v25  ;;  %v850_v25 = vrot.slane %v2578_v60, %v2572_v63  ;;  %v2704_v60 = vld [vmem:[%s2973_s0 + $0x10] sm:$0xff]  }
 0x543   :  { %935 = vmatpush1.msra.mxu0 %v2345_v26  ;;  %v2090_v13 = vpop.eup %2089  ;;  %v1792_v36 = vunpack.c.l.bf16 %v2704_v60  ;;  %v1793_v31 = vunpack.c.h.bf16 %v2704_v60  ;;  %v1755_v60 = vld [vmem:[%s2974_s1 + $0x78] sm:$0xff] }
 0x544   :  { %936 = vmatprep.subr.mxu0 %v2351_v27  ;;  %v2092_v14 = vpop.eup %2091  ;;  %v656_v15 = vadd.f32 1.0, %v2090_v13  ;;  %v1322_v13 = vld [vmem:[%s2975_s2 + $0xa8] sm:$0xff] }
 0x545   :  { %937 = vmatpush1.msra.mxu0 %v2357_v28  ;;  %v655_v16 = vadd.f32 1.0, %v2092_v14  ;;  %v1321_v14 = vld [vmem:[%s2975_s2 + $0xa0] sm:$0xff] }
 0x546   :  { %938 = vmatprep.subr.mxu0 %v2363_v29  ;;  %2093 = vrcp.f32 %v656_v15  ;;  %v1320_v15 = vld [vmem:[%s2975_s2 + $0x98] sm:$0xff] }
 0x547   :  { %939 = vmatpush1.msra.mxu0 %v2369_v30  ;;  %2095 = vrcp.f32 %v655_v16  ;;  %v1319_v16 = vld [vmem:[%s2975_s2 + $0x90] sm:$0xff] }
 0x548   :  { %940 = vmatprep.subr.mxu0 %v2997_v1  ;;  %v1331_v1 = vld [vmem:[%s2975_s2 + $0xf0] sm:$0xff] }
 0x549   :  { %941 = vmatpush1.msra.mxu0 %v2998_v2  ;;  %v1330_v2 = vld [vmem:[%s2975_s2 + $0xe8] sm:$0xff] }
 0x553   :  { %v2094_v23 = vpop.eup %2093 }
 0x554   :  { %v2096_v24 = vpop.eup %2095  ;;  %v854_v26 = vsub.f32 1.0, %v2094_v23  ;;  %v852_v29 = vmul.f32 %v2094_v23, %v850_v25  ;;  %v1312_v23 = vld [vmem:[%s2975_s2 + $0x58] sm:$0xff] }
 0x555   :  { %v853_v28 = vsub.f32 1.0, %v2096_v24  ;;  %v851_v55 = vmul.f32 %v2096_v24, %v850_v25  ;;  %v1311_v24 = vld [vmem:[%s2975_s2 + $0x50] sm:$0xff]  ;;  %v1310_v25 = vld [vmem:[%s2975_s2 + $0x48] sm:$0xff] }
 0x5ea   :  { %v1965_v3 = vpop.f32.mrf.mxu0 }
 0x5eb   :  { %1966 = vmatprep.subr.mxu1 %v1965_v3 }
 0x5ec   :  { %v759_v5 = vpop.f32.mrf.mxu0  ;;  %1967 = vmatpush3.msra.mxu1 %v1965_v3  ;;  %v1329_v3 = vld [vmem:[%s2975_s2 + $0xe0] sm:$0xff] }
 0x5ed   :  { %1968 = vmatprep.subr.mxu1 %v759_v5 }
 0x5ee   :  { %1969 = vmatpush3.msra.mxu1 %v759_v5  ;;  %v1328_v5 = vld [vmem:[%s2975_s2 + $0xd8] sm:$0xff] }
 0x5ef   :  { %1971 = vmatmul.mubr.msk.f32.vlgmr.msra.gmra.mxu1 %vm141_vm0, %v2999_v6  ;;  %v1327_v6 = vld [vmem:[%s2975_s2 + $0xd0] sm:$0xff] }
 0x5f0   :  { %1057 = vmatprep.mubr.f32.mxu1 %v2994_v59 }
 0x6af   :  { %v1972_v18 = vpop.f32.mrf.mxu1 }
 0x6b0   :  { %v844_v20 = vadd.f32 %v1972_v18, %v1741_v17  ;;  %v1318_v17 = vld [vmem:[%s2975_s2 + $0x88] sm:$0xff]  ;;  %v1317_v18 = vld [vmem:[%s2975_s2 + $0x80] sm:$0xff] }
 0x6b1   :  { %v834_v21 = vpop.f32.mrf.mxu1 }
 0x6b2   :  { %2097 = vtanh.f32 %v844_v20  ;;  %v843_v22 = vadd.f32 %v1738_v19, %v834_v21  ;;  %v1316_v19 = vld [vmem:[%s2975_s2 + $0x78] sm:$0xff]  ;;  %v1315_v20 = vld [vmem:[%s2975_s2 + $0x70] sm:$0xff]  ;;  %v1314_v21 = vld [vmem:[%s2975_s2 + $0x68] sm:$0xff] }
 0x6b4   :  { %2099 = vtanh.f32 %v843_v22  ;;  %v1313_v22 = vld [vmem:[%s2975_s2 + $0x60] sm:$0xff] }
 0x6bf   :  { %v2098_v27 = vpop.eup %2097 }
 0x6c0   :  { %v856_v30 = vmul.f32 %v2098_v27, %v854_v26  ;;  %v1309_v26 = vld [vmem:[%s2975_s2 + $0x40] sm:$0xff]  ;;  %v1308_v27 = vld [vmem:[%s2975_s2 + $0x38] sm:$0xff] }
 0x6c1   :  { %v2100_v54 = vpop.eup %2099 }
 0x6c2   :  { %v855_v56 = vmul.f32 %v2100_v54, %v853_v28  ;;  %v2692_v4 = vadd.f32 %v856_v30, %v852_v29  ;;  %v1307_v28 = vld [vmem:[%s2975_s2 + $0x30] sm:$0xff]  ;;  %v1306_v29 = vld [vmem:[%s2975_s2 + $0x28] sm:$0xff]  ;;  %v1305_v30 = vld [vmem:[%s2975_s2 + $0x20] sm:$0xff] }
 0x6c3   :  { %v1304_v54 = vld [vmem:[%s2975_s2 + $0x18] sm:$0xff] }
 0x6c4   :  { %v2694_v34 = vadd.f32 %v855_v56, %v851_v55  ;;  %863 = vst [vmem:[#allocation3 + $0x18] sm:$0xff] %v2692_v4  ;;  %v1303_v55 = vld [vmem:[%s2975_s2 + $0x10] sm:$0xff]  ;;  %v1302_v56 = vld [vmem:[%s2975_s2 + $0x8] sm:$0xff] }
 0x6c6   :  { %862 = vst [vmem:[#allocation3 + $0x10] sm:$0xff] %v2694_v34  ;;  %975 = vmatmul.mubr.f32.vlgmr.msra.gmra.mxu0 %v2694_v34 }
 0x6c7   :  { %980 = vmatprep.mubr.f32.mxu0 %v2994_v59 }
 0x6ca   :  { %981 = vmatmul.mubr.f32.gmra.mxu0 %v2692_v4 }
 0x6cb   :  { %2012 = vmatprep.mubr.msk.f32.mxu0 %vm141_vm0, %v1792_v36 }
 0x786   :  { %v976_v38 = vpop.f32.mrf.mxu0 }
 0x788   :  { %v978_v57 = vpop.f32.mrf.mxu0 }
 0x78a   :  { %v982_v58 = vpop.f32.mrf.mxu0 }
 0x78c   :  { %v984_v0 = vpop.f32.mrf.mxu0 }
 0x78d   :  { %1021 = vmatprep.subr.mxu1 %v984_v0 }
 0x78e   :  { %1022 = vmatpush1.msra.mxu1 %v982_v58 }
 0x78f   :  { %1023 = vmatprep.subr.mxu1 %v978_v57 }
 0x790   :  { %1024 = vmatpush1.msra.mxu1 %v976_v38 }
 0x791   :  { %1758 = vmatmul.mubr.msk.f32.vlgmr.msra.gmra.mxu1 %vm141_vm0, %v1792_v36  ;;  %1973 = vmatprep.subr.mxu1 %v2405_v40  ;;  %v1752_v36 = vld [vmem:[%s2974_s1 + $0x60] sm:$0xff] }
 0x792   :  { %1063 = vmatprep.mubr.f32.mxu1 %v2994_v59  ;;  %1974 = vmatpush3.msra.mxu1 %v2405_v40  ;;  %v3000_v40 = vld [vmem:[#allocation9_spill] sm:$0xff] }
 0x793   :  { %1975 = vmatprep.subr.mxu1 %v2412_v41 }
 0x794   :  { %1976 = vmatpush3.msra.mxu1 %v2412_v41  ;;  %v3001_v41 = vld [vmem:[#allocation10_spill] sm:$0xff] }
 0x795   :  { %1759 = vmatmul.mubr.msk.f32.gmra.mxu1 %vm141_vm0, %v1793_v31  ;;  %1977 = vmatprep.subr.mxu1 %v2419_v42 }
 0x796   :  { %1978 = vmatpush3.msra.mxu1 %v2419_v42 }
 0x797   :  { %1979 = vmatprep.subr.mxu1 %v2426_v43 }
 0x798   :  { %1980 = vmatpush3.msra.mxu1 %v2426_v43  ;;  %v1753_v43 = vld [vmem:[%s2974_s1 + $0x68] sm:$0xff] }
 0x799   :  { %1981 = vmatprep.subr.mxu1 %v2433_v44 }
 0x79a   :  { %1982 = vmatpush3.msra.mxu1 %v2433_v44 }
 0x79b   :  { %1983 = vmatprep.subr.mxu1 %v2440_v45 }
 0x79c   :  { %1984 = vmatpush3.msra.mxu1 %v2440_v45 }
 0x79d   :  { %1985 = vmatprep.subr.mxu1 %v2447_v46 }
 0x79e   :  { %1986 = vmatpush3.msra.mxu1 %v2447_v46 }
 0x79f   :  { %1987 = vmatprep.subr.mxu1 %v2454_v47 }
 0x7a0   :  { %1988 = vmatpush3.msra.mxu1 %v2454_v47  ;;  %v1756_v47 = vld [vmem:[%s2974_s1 + $0x80] sm:$0xff] }
 0x7a1   :  { %1989 = vmatprep.subr.mxu1 %v2461_v48 }
 0x7a2   :  { %1990 = vmatpush3.msra.mxu1 %v2461_v48 }
 0x7a3   :  { %1991 = vmatprep.subr.mxu1 %v2468_v49 }
 0x7a4   :  { %1992 = vmatpush3.msra.mxu1 %v2468_v49 }
 0x7a5   :  { %1993 = vmatprep.subr.mxu1 %v2475_v50 }
 0x7a6   :  { %1994 = vmatpush3.msra.mxu1 %v2475_v50 }
 0x7a7   :  { %1995 = vmatprep.subr.mxu1 %v2482_v51 }
 0x7a8   :  { %1996 = vmatpush3.msra.mxu1 %v2482_v51 }
 0x7a9   :  { %1997 = vmatprep.subr.mxu1 %v2489_v52 }
 0x7aa   :  { %1998 = vmatpush3.msra.mxu1 %v2489_v52 }
 0x7ab   :  { %1999 = vmatprep.subr.mxu1 %v2496_v53 }
 0x7ac   :  { %2000 = vmatpush3.msra.mxu1 %v2496_v53 }
 0x7ad   :  { %2001 = vmatprep.subr.mxu1 %v3000_v40 }
 0x7ae   :  { %2002 = vmatpush3.msra.mxu1 %v3000_v40 }
 0x7af   :  { %2003 = vmatprep.subr.mxu1 %v3001_v41 }
 0x7b0   :  { %2004 = vmatpush3.msra.mxu1 %v3001_v41 }
 0x7b1   :  { %1333 = vmatprep.subr.mxu1 %v1332_v37 }
 0x851   :  { %v2746_v42 = vpop.f32.mrf.mxu1 }
 0x852   :  { %v1070_v57 = vadd.f32 %v1752_v36, %v2746_v42 }
 0x853   :  { %v1061_v44 = vpop.f32.mrf.mxu1 }
 0x854   :  { %v1084_v45 = vadd.f32 %v1753_v43, %v1061_v44  ;;  %v1760_v0 = vmul.f32 -1.442695, %v1070_v57  ;;  %v1757_v44 = vld [vmem:[%s2974_s1 + $0x88] sm:$0xff] }
 0x855   :  { %v2751_v46 = vpop.f32.mrf.mxu1 }
 0x856   :  { %v1762_v48 = vmul.f32 -1.442695, %v1084_v45  ;;  %v1071_v38 = vadd.f32 %v1755_v60, %v2751_v46  ;;  %v1754_v46 = vld [vmem:[%s2974_s1 + $0x70] sm:$0xff] }
 0x857   :  { %v1067_v49 = vpop.f32.mrf.mxu1 }
 0x858   :  { %2101 = vpow2.f32 %v1762_v48  ;;  %v1085_v50 = vadd.f32 %v1756_v47, %v1067_v49  ;;  %v1761_v58 = vmul.f32 -1.442695, %v1071_v38 }
 0x85a   :  { %v1763_v51 = vmul.f32 -1.442695, %v1085_v50 }
 0x85c   :  { %2103 = vpow2.f32 %v1763_v51  ;;  %v1273_v51 = vrot.slane %v2694_v34, %v2572_v63 }
 0x865   :  { %v2102_v52 = vpop.eup %2101 }
 0x866   :  { %v1092_v53 = vadd.f32 1.0, %v2102_v52 }
 0x868   :  { %2105 = vrcp.f32 %v1092_v53 }
 0x869   :  { %v2104_v32 = vpop.eup %2103 }
 0x86a   :  { %v1093_v39 = vadd.f32 1.0, %v2104_v32 }
 0x86c   :  { %2107 = vrcp.f32 %v1093_v39 }
 0x86d   :  { %2109 = vpow2.f32 %v1761_v58 }
 0x86e   :  { %2111 = vpow2.f32 %v1760_v0 }
 0x875   :  { %v2106_v61 = vpop.eup %2105 }
 0x876   :  { %v1098_v62 = vmul.f32 %v2106_v61, %v2694_v34  ;;  %v2887_v34 = vld [vmem:[%s2973_s0 + $0x18] sm:$0xff]  }
 0x878   :  { %2005 = vmatprep.mubr.f32.mxu1 %v1098_v62 }
 0x879   :  { %v2108_v35 = vpop.eup %2107 }
 0x87a   :  { %v1099_v33 = vmul.f32 %v2108_v35, %v2692_v4  ;;  %v1301_v4 = vld [vmem:[%s2975_s2] sm:$0xff] }
 0x87c   :  { %2006 = vmatmul.mubr.f32.vlgmr.msra.gmra.mxu1 %v1099_v33 }
 0x87d   :  { %1397 = vmatprep.mubr.f32.mxu1 %v2994_v59  ;;  %1334 = vmatpush1.msra.mxu1 %v1331_v1 }
 0x87e   :  { %1335 = vmatprep.subr.mxu1 %v1330_v2  ;;  %v1796_v2 = vunpack.c.l.bf16 %v2887_v34 }
 0x87f   :  { %1336 = vmatpush1.msra.mxu1 %v1329_v3 }
 0x880   :  { %1337 = vmatprep.subr.mxu1 %v1328_v5 }
 0x881   :  { %1338 = vmatpush1.msra.mxu1 %v1327_v6 }
 0x882   :  { %1339 = vmatprep.subr.mxu1 %v1326_v7 }
 0x883   :  { %1340 = vmatpush1.msra.mxu1 %v1325_v8  ;;  %v1797_v8 = vunpack.c.h.bf16 %v2887_v34 }
 0x884   :  { %1341 = vmatprep.subr.mxu1 %v1324_v9  ;;  %v1538_v9 = vld [vmem:[%s2976_s3 + $0x78] sm:$0xff] }
 0x885   :  { %1342 = vmatpush1.msra.mxu1 %v1323_v12  ;;  %v1534_v12 = vld [vmem:[%s2976_s3 + $0x58] sm:$0xff] }
 0x886   :  { %1343 = vmatprep.subr.mxu1 %v1322_v13  ;;  %v1533_v13 = vld [vmem:[%s2976_s3 + $0x50] sm:$0xff] }
 0x887   :  { %1344 = vmatpush1.msra.mxu1 %v1321_v14  ;;  %v1532_v14 = vld [vmem:[%s2976_s3 + $0x48] sm:$0xff] }
 0x888   :  { %1345 = vmatprep.subr.mxu1 %v1320_v15  ;;  %v1531_v15 = vld [vmem:[%s2976_s3 + $0x40] sm:$0xff] }
 0x889   :  { %1346 = vmatpush1.msra.mxu1 %v1319_v16  ;;  %v1530_v16 = vld [vmem:[%s2976_s3 + $0x38] sm:$0xff] }
 0x88a   :  { %1347 = vmatprep.subr.mxu1 %v1318_v17  ;;  %v1529_v17 = vld [vmem:[%s2976_s3 + $0x30] sm:$0xff] }
 0x88b   :  { %1348 = vmatpush1.msra.mxu1 %v1317_v18  ;;  %v1528_v18 = vld [vmem:[%s2976_s3 + $0x28] sm:$0xff] }
 0x88c   :  { %1349 = vmatprep.subr.mxu1 %v1316_v19  ;;  %v1527_v19 = vld [vmem:[%s2976_s3 + $0x20] sm:$0xff] }
 0x88d   :  { %1350 = vmatpush1.msra.mxu1 %v1315_v20  ;;  %v1526_v20 = vld [vmem:[%s2976_s3 + $0x18] sm:$0xff] }
 0x88e   :  { %1351 = vmatprep.subr.mxu1 %v1314_v21  ;;  %v1525_v21 = vld [vmem:[%s2976_s3 + $0x10] sm:$0xff] }
 0x88f   :  { %1352 = vmatpush1.msra.mxu1 %v1313_v22  ;;  %v1524_v22 = vld [vmem:[%s2976_s3 + $0x8] sm:$0xff] }
 0x890   :  { %1353 = vmatprep.subr.mxu1 %v1312_v23  ;;  %v1523_v23 = vld [vmem:[%s2976_s3] sm:$0xff] }
 0x891   :  { %1354 = vmatpush1.msra.mxu1 %v1311_v24 }
 0x892   :  { %1355 = vmatprep.subr.mxu1 %v1310_v25  ;;  %v1769_v25 = vld [vmem:[%s2974_s1 + $0x98] sm:$0xff] }
 0x893   :  { %1356 = vmatpush1.msra.mxu1 %v1309_v26 }
 0x894   :  { %1357 = vmatprep.subr.mxu1 %v1308_v27 }
 0x895   :  { %1358 = vmatpush1.msra.mxu1 %v1307_v28 }
 0x896   :  { %1359 = vmatprep.subr.mxu1 %v1306_v29  ;;  %v1772_v29 = vld [vmem:[%s2974_s1 + $0xb0] sm:$0xff] }
 0x897   :  { %1360 = vmatpush1.msra.mxu1 %v1305_v30 }
 0x898   :  { %1361 = vmatprep.subr.mxu1 %v1304_v54 }
 0x899   :  { %1362 = vmatpush1.msra.mxu1 %v1303_v55 }
 0x89a   :  { %1363 = vmatprep.subr.mxu1 %v1302_v56 }
 0x89b   :  { %1364 = vmatpush1.msra.mxu1 %v1301_v4 }
 0x93c   :  { %v2007_v10 = vpop.f32.mrf.mxu1 }
 0x93d   :  { %2008 = vmatprep.subr.mxu0 %v2007_v10 }
 0x93e   :  { %v1182_v11 = vpop.f32.mrf.mxu1  ;;  %2009 = vmatpush3.msra.mxu0 %v2007_v10  ;;  %v1537_v10 = vld [vmem:[%s2976_s3 + $0x70] sm:$0xff] }
 0x93f   :  { %2010 = vmatprep.subr.mxu0 %v1182_v11 }
 0x940   :  { %2011 = vmatpush3.msra.mxu0 %v1182_v11  ;;  %v1535_v11 = vld [vmem:[%s2976_s3 + $0x60] sm:$0xff] }
 0x941   :  { %2013 = vmatmul.mubr.msk.f32.vlgmr.msra.gmra.mxu0 %vm141_vm0, %v1793_v31  ;;  %v2110_v31 = vpop.eup %2109 }
 0x942   :  { %1480 = vmatprep.mubr.f32.mxu0 %v2994_v59  ;;  %v2112_v40 = vpop.eup %2111  ;;  %v1079_v41 = vadd.f32 1.0, %v2110_v31 }
 0x943   :  { %v1078_v43 = vadd.f32 1.0, %v2112_v40 }
 0x944   :  { %2113 = vrcp.f32 %v1079_v41 }
 0x945   :  { %2115 = vrcp.f32 %v1078_v43  ;;  %v1771_v43 = vld [vmem:[%s2974_s1 + $0xa8] sm:$0xff] }
 0x951   :  { %v2114_v49 = vpop.eup %2113 }
 0x952   :  { %v2116_v50 = vpop.eup %2115  ;;  %v1277_v52 = vsub.f32 1.0, %v2114_v49  ;;  %v1275_v39 = vmul.f32 %v2114_v49, %v1273_v51 }
 0x953   :  { %v1276_v32 = vsub.f32 1.0, %v2116_v50  ;;  %v1274_v35 = vmul.f32 %v2116_v50, %v1273_v51 }
 0xa01   :  { %v2014_v45 = vpop.f32.mrf.mxu0 }
 0xa02   :  { %v1267_v42 = vadd.f32 %v2014_v45, %v1757_v44  ;;  %v1768_v44 = vld [vmem:[%s2974_s1 + $0x90] sm:$0xff] }
 0xa03   :  { %v1257_v47 = vpop.f32.mrf.mxu0 }
 0xa04   :  { %2117 = vtanh.f32 %v1267_v42  ;;  %v1266_v48 = vadd.f32 %v1754_v46, %v1257_v47 }
 0xa06   :  { %2119 = vtanh.f32 %v1266_v48 }
 0xa11   :  { %v2118_v53 = vpop.eup %2117 }
 0xa12   :  { %v1279_v61 = vmul.f32 %v2118_v53, %v1277_v52  ;;  %v1773_v52 = vld [vmem:[%s2974_s1 + $0xb8] sm:$0xff] }
 0xa13   :  { %v2120_v62 = vpop.eup %2119 }
 0xa14   :  { %v1278_v33 = vmul.f32 %v2120_v62, %v1276_v32  ;;  %v2875_v37 = vadd.f32 %v1279_v61, %v1275_v39  ;;  %v1770_v32 = vld [vmem:[%s2974_s1 + $0xa0] sm:$0xff]  ;;  %s2141_s1 = scalar_lea.vmem %s1716_s25, 1024 }
 0xa15   :  { %p2142_p0 = scmp.ne.s32.totalorder %s1716_s25, %s2141_s1  ;;  %p2147_p2 = scmp.lt.s32.totalorder %s2141_s1, %s2141_s1 }
 0xa16   :  { %v2877_v1 = vadd.f32 %v1278_v33, %v1274_v35  ;;  %1286 = vst [vmem:[#allocation3 + $0x28] sm:$0xff] %v2875_v37 }
 0xa17   :  { %p2148_p3 = por %p2147_p2, %p2146_p1 }
 0xa18   :  { %1285 = vst [vmem:[#allocation3 + $0x20] sm:$0xff] %v2877_v1  ;;  %1398 = vmatmul.mubr.f32.vlgmr.msra.gmra.mxu1 %v2877_v1 }
 0xa19   :  { %1403 = vmatprep.mubr.f32.mxu1 %v2994_v59  ;;  %p2149_p4 = pnand %p2148_p3, %p2142_p0 }
 0xa1c   :  { %1404 = vmatmul.mubr.f32.gmra.mxu1 %v2875_v37 }
 0xa1d   :  { %2054 = vmatprep.mubr.msk.f32.mxu1 %vm141_vm0, %v1796_v2 }
 0xad8   :  { %v1399_v3 = vpop.f32.mrf.mxu1 }
 0xada   :  { %v1401_v5 = vpop.f32.mrf.mxu1 }
 0xadc   :  { %v1405_v6 = vpop.f32.mrf.mxu1 }
 0xade   :  { %v1407_v7 = vpop.f32.mrf.mxu1 }
 0xadf   :  { %1444 = vmatprep.subr.mxu0 %v1407_v7 }
 0xae0   :  { %1445 = vmatpush1.msra.mxu0 %v1405_v6 }
 0xae1   :  { %1446 = vmatprep.subr.mxu0 %v1401_v5 }
 0xae2   :  { %1447 = vmatpush1.msra.mxu0 %v1399_v3 }
 0xae3   :  { %1774 = vmatmul.mubr.msk.f32.vlgmr.msra.gmra.mxu0 %vm141_vm0, %v1796_v2  ;;  %2015 = vmatprep.subr.mxu0 %v1538_v9 }
 0xae4   :  { %1486 = vmatprep.mubr.f32.mxu0 %v2994_v59  ;;  %2016 = vmatpush3.msra.mxu0 %v1538_v9  ;;  %v1536_v59 = vld [vmem:[%s2976_s3 + $0x68] sm:$0xff] }
 0xae5   :  { %2017 = vmatprep.subr.mxu0 %v1537_v10 }
 0xae6   :  { %2018 = vmatpush3.msra.mxu0 %v1537_v10 }
 0xae7   :  { %1775 = vmatmul.mubr.msk.f32.gmra.mxu0 %vm141_vm0, %v1797_v8  ;;  %2019 = vmatprep.subr.mxu0 %v1536_v59 }
 0xae8   :  { %2020 = vmatpush3.msra.mxu0 %v1536_v59 }
 0xae9   :  { %2021 = vmatprep.subr.mxu0 %v1535_v11 }
 0xaea   :  { %2022 = vmatpush3.msra.mxu0 %v1535_v11 }
 0xaeb   :  { %2023 = vmatprep.subr.mxu0 %v1534_v12 }
 0xaec   :  { %2024 = vmatpush3.msra.mxu0 %v1534_v12 }
 0xaed   :  { %2025 = vmatprep.subr.mxu0 %v1533_v13 }
 0xaee   :  { %2026 = vmatpush3.msra.mxu0 %v1533_v13 }
 0xaef   :  { %2027 = vmatprep.subr.mxu0 %v1532_v14 }
 0xaf0   :  { %2028 = vmatpush3.msra.mxu0 %v1532_v14 }
 0xaf1   :  { %2029 = vmatprep.subr.mxu0 %v1531_v15 }
 0xaf2   :  { %2030 = vmatpush3.msra.mxu0 %v1531_v15 }
 0xaf3   :  { %2031 = vmatprep.subr.mxu0 %v1530_v16 }
 0xaf4   :  { %2032 = vmatpush3.msra.mxu0 %v1530_v16 }
 0xaf5   :  { %2033 = vmatprep.subr.mxu0 %v1529_v17 }
 0xaf6   :  { %2034 = vmatpush3.msra.mxu0 %v1529_v17 }
 0xaf7   :  { %2035 = vmatprep.subr.mxu0 %v1528_v18 }
 0xaf8   :  { %2036 = vmatpush3.msra.mxu0 %v1528_v18 }
 0xaf9   :  { %2037 = vmatprep.subr.mxu0 %v1527_v19 }
 0xafa   :  { %2038 = vmatpush3.msra.mxu0 %v1527_v19 }
 0xafb   :  { %2039 = vmatprep.subr.mxu0 %v1526_v20 }
 0xafc   :  { %2040 = vmatpush3.msra.mxu0 %v1526_v20 }
 0xafd   :  { %2041 = vmatprep.subr.mxu0 %v1525_v21 }
 0xafe   :  { %2042 = vmatpush3.msra.mxu0 %v1525_v21 }
 0xaff   :  { %2043 = vmatprep.subr.mxu0 %v1524_v22 }
 0xb00   :  { %2044 = vmatpush3.msra.mxu0 %v1524_v22 }
 0xb01   :  { %2045 = vmatprep.subr.mxu0 %v1523_v23 }
 0xb02   :  { %2046 = vmatpush3.msra.mxu0 %v1523_v23 }
 0xba3   :  { %v1482_v24 = vpop.f32.mrf.mxu0 }
 0xba4   :  { %v1493_v46 = vadd.f32 %v1768_v44, %v1482_v24 }
 0xba5   :  { %v1484_v26 = vpop.f32.mrf.mxu0 }
 0xba6   :  { %v1507_v27 = vadd.f32 %v1769_v25, %v1484_v26  ;;  %v1776_v47 = vmul.f32 -1.442695, %v1493_v46 }
 0xba7   :  { %v1488_v28 = vpop.f32.mrf.mxu0 }
 0xba8   :  { %v1778_v30 = vmul.f32 -1.442695, %v1507_v27  ;;  %v1494_v45 = vadd.f32 %v1771_v43, %v1488_v28 }
 0xba9   :  { %v1490_v54 = vpop.f32.mrf.mxu0 }
 0xbaa   :  { %2121 = vpow2.f32 %v1778_v30  ;;  %v1508_v55 = vadd.f32 %v1772_v29, %v1490_v54  ;;  %v1777_v42 = vmul.f32 -1.442695, %v1494_v45 }
 0xbac   :  { %v1779_v56 = vmul.f32 -1.442695, %v1508_v55 }
 0xbae   :  { %2123 = vpow2.f32 %v1779_v56 }
 0xbb7   :  { %v2122_v4 = vpop.eup %2121 }
 0xbb8   :  { %v1515_v60 = vadd.f32 1.0, %v2122_v4 }
 0xbba   :  { %2125 = vrcp.f32 %v1515_v60 }
 0xbbb   :  { %v2124_v36 = vpop.eup %2123 }
 0xbbc   :  { %v1516_v38 = vadd.f32 1.0, %v2124_v36 }
 0xbbe   :  { %2127 = vrcp.f32 %v1516_v38 }
 0xbbf   :  { %2129 = vpow2.f32 %v1777_v42 }
 0xbc0   :  { %2131 = vpow2.f32 %v1776_v47 }
 0xbc7   :  { %v2126_v57 = vpop.eup %2125 }
 0xbc8   :  { %v1521_v58 = vmul.f32 %v2126_v57, %v2877_v1 }
 0xbca   :  { %2047 = vmatprep.mubr.f32.mxu0 %v1521_v58 }
 0xbcb   :  { %v2128_v0 = vpop.eup %2127 }
 0xbcc   :  { %v1522_v31 = vmul.f32 %v2128_v0, %v2875_v37  ;;  %v2130_v48 = vpop.eup %2129  ;;  %v1696_v37 = vrot.slane %v2877_v1, %v2572_v63 }
 0xbcd   :  { %v2132_v49 = vpop.eup %2131  ;;  %v1502_v50 = vadd.f32 1.0, %v2130_v48 }
 0xbce   :  { %2048 = vmatmul.mubr.f32.vlgmr.msra.gmra.mxu0 %v1522_v31  ;;  %v1501_v51 = vadd.f32 1.0, %v2132_v49 }
 0xbcf   :  { %2133 = vrcp.f32 %v1502_v50 }
 0xbd0   :  { %2135 = vrcp.f32 %v1501_v51 }
 0xbdc   :  { %v2134_v35 = vpop.eup %2133 }
 0xbdd   :  { %v2136_v33 = vpop.eup %2135  ;;  %v1700_v34 = vsub.f32 1.0, %v2134_v35  ;;  %v1698_v3 = vmul.f32 %v2134_v35, %v1696_v37 }
 0xbde   :  { %v1699_v6 = vsub.f32 1.0, %v2136_v33  ;;  %v1697_v9 = vmul.f32 %v2136_v33, %v1696_v37 }
 0xc8e   :  { %v2049_v40 = vpop.f32.mrf.mxu0 }
 0xc8f   :  { %2050 = vmatprep.subr.mxu1 %v2049_v40 }
 0xc90   :  { %v1605_v41 = vpop.f32.mrf.mxu0  ;;  %2051 = vmatpush3.msra.mxu1 %v2049_v40 }
 0xc91   :  { %2052 = vmatprep.subr.mxu1 %v1605_v41 }
 0xc92   :  { %2053 = vmatpush3.msra.mxu1 %v1605_v41 }
 0xc93   :  { %2055 = vmatmul.mubr.msk.f32.vlgmr.msra.gmra.mxu1 %vm141_vm0, %v1797_v8 }
 0xd53   :  { %v2056_v53 = vpop.f32.mrf.mxu1 }
 0xd54   :  { %v1690_v39 = vadd.f32 %v2056_v53, %v1773_v52 }
 0xd55   :  { %v1680_v61 = vpop.f32.mrf.mxu1 }
 0xd56   :  { %2137 = vtanh.f32 %v1690_v39  ;;  %v1689_v62 = vadd.f32 %v1770_v32, %v1680_v61 }
 0xd58   :  { %2139 = vtanh.f32 %v1689_v62 }
 0xd63   :  { %v2138_v2 = vpop.eup %2137 }
 0xd64   :  { %v1702_v5 = vmul.f32 %v2138_v2, %v1700_v34 }
 0xd65   :  { %v2140_v7 = vpop.eup %2139 }
 0xd66   :  { %v1704_v8 = vadd.f32 %v1702_v5, %v1698_v3  ;;  %v1701_v10 = vmul.f32 %v2140_v7, %v1699_v6 }
 0xd68   :  { %1709 = vst [vmem:[#allocation3 + $0x38] sm:$0xff] %v1704_v8  ;;  %v1703_v59 = vadd.f32 %v1701_v10, %v1697_v9 }
 0xd6a   :  { %1708 = vst [vmem:[#allocation3 + $0x30] sm:$0xff] %v1703_v59 }
 0xd6b   :  { %2152 = shalt.err (!%p2149_p4)
}
 0xd6c   :  { %s2165_s26 = smov 128   ;;  %s2166_s27 = smov 8  }
 0xd6d   :  { %1721 = dma.vmem_to_hbm [thread:$0]  %s1716_s25, 1024, %s2977_s4, [#allocation4], %s2165_s26, %s2165_s26, %s2166_s27  }
 0xd6e   :  { %2161 = dma.done.wait [#allocation4], 1024  }
 0xd6f   :  { %2162 = vsyncadd [#allocation4], 4294966272 }
 0xd70   :  { %1725 = vsyncpa [#allocation4], 1 }

</bundles_post_ra>
